<compile_context>
chip_gen: v6e
topology: v6e:2x2x1
jax: 0.10.0
libtpu: 0.0.40
codegen_flags: <defaults>
</compile_context>

<pallas_src>
import numpy as np

import jax
import jax.numpy as jnp
from jax.experimental import pallas as pl
from jax.experimental.pallas import tpu as pltpu


# ----------------------------------------------------------------------------
# Fused whole-network kernel (one grid step = one batch tile)
# ----------------------------------------------------------------------------
def _net_fused_kernel(xl_ref, m1_ref, b1_ref, m2_ref, b2_ref,
                      g_ref, fb1_ref, w2_ref, fb2_ref, o_ref):
    tb6 = xl_ref.shape[1]            # tile_b * 6
    tb = tb6 // 6

    # ----------------- conv1 (5x5, 1->10) + 2x2 maxpool + relu ----------------
    # One matmul for both pooled-row parities (they share the banded weight):
    # rows = (p, b, s), K = 6 input rows x 28 cols = 168,
    # output lanes = dy*256 + dx*128 + px*10 + co  (8 pad lanes per 128-group).
    xw = xl_ref[...].reshape(2 * tb6, 168)                      # bf16, cheap merge
    a = jnp.dot(xw, m1_ref[...], preferred_element_type=jnp.float32)  # (12tb,512)
    a = jnp.maximum(a[:, :256], a[:, 256:])                     # max over dy quad
    a = jnp.maximum(a[:, :128], a[:, 128:])                     # max over dx quad
    h1a = jnp.maximum(a + b1_ref[...], 0.0).astype(jnp.bfloat16)  # bias after max
    # split by pooled-row parity p (pooled row = 2*s + p), keep (b, s) structure
    h1 = [h1a[:tb6].reshape(tb, 6, 128), h1a[tb6:].reshape(tb, 6, 128)]

    # ------ conv2 (5x5, 10->20) + Dropout2d(eval) + 2x2 maxpool + relu --------
    # "Unfold" h1 over the 6-row (5-tap x 2-pool) window into a single LHS:
    # rows = (b, qy), lanes = t*128 + px*10 + ci, t = pooled-row offset in [0,6).
    pieces = []
    for t in range(6):
        pr, o = t % 2, t // 2
        pieces.append(h1[pr][:, o:o + 4, :].reshape(tb * 4, 128))
    e = jnp.concatenate(pieces, axis=1)                         # (4tb, 768) bf16
    a2 = jnp.dot(e, m2_ref[...], preferred_element_type=jnp.float32)  # (4tb,512)
    a2 = jnp.maximum(a2[:, :256], a2[:, 256:])                  # max over dy quad
    a2 = jnp.maximum(a2[:, :128], a2[:, 128:])                  # max over dx quad
    h2 = jnp.maximum(a2 + b2_ref[...], 0.0).astype(jnp.bfloat16)  # (4tb, 128)

    # ---------- fc1 + relu + dropout(eval) + fc2 + log_softmax ----------------
    # Fold qy into lanes -> single (tb, 512) @ (512, 50) dot; the PyTorch CHW
    # flatten permutation (and the pad lanes) are folded into g_ref.
    h2r = h2.reshape(tb, 4, 128)
    v = jnp.concatenate([h2r[:, qy, :] for qy in range(4)], axis=1)   # (tb, 512)
    f = jnp.dot(v, g_ref[...], preferred_element_type=jnp.float32) + fb1_ref[...]
    f = jnp.maximum(f, 0.0)
    logits = jnp.dot(f.astype(jnp.bfloat16), w2_ref[...],
                     preferred_element_type=jnp.float32) + fb2_ref[...]
    z = logits - jnp.max(logits, axis=-1, keepdims=True)
    o_ref[...] = z - jnp.log(jnp.sum(jnp.exp(z), axis=-1, keepdims=True))


# ----------------------------------------------------------------------------
# Wrapper: one fused pallas_call, gridded over the batch
# ----------------------------------------------------------------------------
def net_forward(x, params):
    """Eval-mode forward matching Net.forward.  x: (B, 1, 28, 28) float32."""
    m1e, b1r, m2e, b2r, g, fb1, w2f, fb2 = params
    bsz = x.shape[0]

    bp8 = max(8, ((bsz + 7) // 8) * 8)          # sublane-aligned batch
    tile_b = min(128, bp8)                      # big tiles: overhead-amortized,
    bp = ((bp8 + tile_b - 1) // tile_b) * tile_b  # still well inside VMEM

    xs = x[:, 0, :, :]                                          # (B, 28, 28)
    if bp != bsz:
        xs = jnp.concatenate(
            [xs, jnp.zeros((bp - bsz, 28, 28), xs.dtype)], axis=0)

    # Conv1 LHS slab (lane-dense, tap-stacked, pool-row-parity split), bf16:
    #   xl[p, b*6+s, u*28+c] = xs[b, 4*s + 2*p + u, c],  u in [0,6)
    rows = 4 * np.arange(6)[:, None] + np.arange(6)[None, :]    # (6, 6) -> 0..25
    parts = [xs[:, rows + 2 * p, :].reshape(bp, 6, 168) for p in range(2)]
    xl = jnp.stack(parts, axis=0).reshape(2, bp * 6, 168).astype(jnp.bfloat16)

    grid = (bp // tile_b,)
    out = pl.pallas_call(
        _net_fused_kernel,
        out_shape=jax.ShapeDtypeStruct((bp, 10), jnp.float32),
        grid_spec=pltpu.PrefetchScalarGridSpec(
            num_scalar_prefetch=0,
            grid=grid,
            in_specs=[
                pl.BlockSpec((2, tile_b * 6, 168), lambda i: (0, i, 0)),  # input
                pl.BlockSpec((168, 512), lambda i: (0, 0)),   # conv1 banded W (bf16)
                pl.BlockSpec((1, 128), lambda i: (0, 0)),     # conv1 bias row
                pl.BlockSpec((768, 512), lambda i: (0, 0)),   # conv2 banded W (bf16)
                pl.BlockSpec((1, 128), lambda i: (0, 0)),     # conv2 bias row
                pl.BlockSpec((512, 50), lambda i: (0, 0)),    # fc1 (flatten folded)
                pl.BlockSpec((1, 50), lambda i: (0, 0)),      # fc1 bias
                pl.BlockSpec((50, 10), lambda i: (0, 0)),     # fc2 weight
                pl.BlockSpec((1, 10), lambda i: (0, 0)),      # fc2 bias
            ],
            out_specs=pl.BlockSpec((tile_b, 10), lambda i: (i, 0)),
        ),
        compiler_params=pltpu.CompilerParams(
            dimension_semantics=("parallel",),
        ),
    )(xl, m1e, b1r, m2e, b2r, g, fb1, w2f, fb2)
    return out[:bsz]


# ----------------------------------------------------------------------------
# Parameters: PyTorch-layout weights -> kernel operands (one-time plumbing)
# ----------------------------------------------------------------------------
def init_torch_params(key):
    """Deterministic synthetic parameters in PyTorch layouts."""
    ks = jax.random.split(key, 8)
    W1 = 0.1 * jax.random.normal(ks[0], (10, 1, 5, 5), jnp.float32)
    B1 = 0.1 * jax.random.normal(ks[1], (10,), jnp.float32)
    W2 = 0.1 * jax.random.normal(ks[2], (20, 10, 5, 5), jnp.float32)
    B2 = 0.1 * jax.random.normal(ks[3], (20,), jnp.float32)
    FW1 = 0.1 * jax.random.normal(ks[4], (50, 320), jnp.float32)
    FB1 = 0.1 * jax.random.normal(ks[5], (50,), jnp.float32)
    FW2 = 0.1 * jax.random.normal(ks[6], (10, 50), jnp.float32)
    FB2 = 0.1 * jax.random.normal(ks[7], (10,), jnp.float32)
    return (W1, B1, W2, B2, FW1, FB1, FW2, FB2)


def prepare_params(torch_params):
    """Build tap-stacked banded conv matrices (128-aligned lane groups) and the
    flatten-folded fc1 weight.  Pure numpy, done once."""
    W1, B1, W2, B2, FW1, FB1, FW2, FB2 = (
        np.asarray(p, np.float32) for p in torch_params)

    # conv1: K = u*28 + x_in (6 input rows x 28 cols),
    #        lanes = dy*256 + dx*128 + px*10 + co  (lanes 120..127 of each
    #        128-group are zero padding).
    m1e = np.zeros((168, 512), np.float32)
    for dy in range(2):
        for dx in range(2):
            for px in range(12):
                for ky in range(5):
                    for kx in range(5):
                        u = dy + ky
                        x_in = 2 * px + dx + kx
                        col = dy * 256 + dx * 128 + px * 10
                        m1e[u * 28 + x_in, col:col + 10] = W1[:, 0, ky, kx]
    b1r = np.zeros((1, 128), np.float32)
    b1r[0, :120] = np.tile(B1, 12)                 # lane = px*10 + co

    # conv2: K = t*128 + px*10 + ci  (t = pooled-row offset 0..5),
    #        lanes = dy2*256 + dx*128 + qx*20 + do (lanes 80..127 padded).
    m2e = np.zeros((768, 512), np.float32)
    for dy2 in range(2):
        for dx in range(2):
            for qx in range(4):
                for ky in range(5):
                    for kx in range(5):
                        t = dy2 + ky
                        px = 2 * qx + dx + kx
                        col = dy2 * 256 + dx * 128 + qx * 20
                        for ci in range(10):
                            m2e[t * 128 + px * 10 + ci, col:col + 20] = \
                                W2[:, ci, ky, kx]
    b2r = np.zeros((1, 128), np.float32)
    b2r[0, :80] = np.tile(B2, 4)                   # lane = qx*20 + do

    # fc1 with PyTorch's CHW flatten (index = do*16 + qy*4 + qx) folded in;
    # kernel lane index for v is qy*128 + qx*20 + do (pad rows stay zero).
    g = np.zeros((512, 50), np.float32)
    for qy in range(4):
        for qx in range(4):
            for do in range(20):
                g[qy * 128 + qx * 20 + do, :] = FW1[:, do * 16 + qy * 4 + qx]
    fb1 = FB1[None, :]                             # (1, 50)
    w2f = np.ascontiguousarray(FW2.T)              # (50, 10)
    fb2 = FB2[None, :]                             # (1, 10)

    return (jnp.asarray(m1e, jnp.bfloat16), jnp.asarray(b1r),
            jnp.asarray(m2e, jnp.bfloat16), jnp.asarray(b2r),
            jnp.asarray(g, jnp.bfloat16), jnp.asarray(fb1),
            jnp.asarray(w2f, jnp.bfloat16), jnp.asarray(fb2))


# ----------------------------------------------------------------------------
# Pure-XLA reference (for verification only)
# ----------------------------------------------------------------------------
def _pool2x2(a):
    return jnp.maximum(
        jnp.maximum(a[:, :, 0::2, 0::2], a[:, :, 0::2, 1::2]),
        jnp.maximum(a[:, :, 1::2, 0::2], a[:, :, 1::2, 1::2]))


def net_forward_reference(x, torch_params):
    W1, B1, W2, B2, FW1, FB1, FW2, FB2 = torch_params
    dn = ('NCHW', 'OIHW', 'NCHW')
    hp = jax.lax.Precision.HIGHEST
    c1 = jax.lax.conv_general_dilated(x, W1, (1, 1), 'VALID',
                                      dimension_numbers=dn, precision=hp)
    h1 = jnp.maximum(_pool2x2(c1 + B1[None, :, None, None]), 0.0)
    c2 = jax.lax.conv_general_dilated(h1, W2, (1, 1), 'VALID',
                                      dimension_numbers=dn, precision=hp)
    h2 = jnp.maximum(_pool2x2(c2 + B2[None, :, None, None]), 0.0)
    v = h2.reshape(h2.shape[0], 320)
    f = jnp.maximum(jnp.dot(v, FW1.T, precision=hp) + FB1, 0.0)
    logits = jnp.dot(f, FW2.T, precision=hp) + FB2
    return jax.nn.log_softmax(logits, axis=-1)


if __name__ == "__main__":
    torch_params = init_torch_params(jax.random.PRNGKey(42))
    params = prepare_params(torch_params)
    x = jax.random.normal(jax.random.PRNGKey(0), (2, 1, 28, 28), jnp.float32)

    out = jax.block_until_ready(jax.jit(net_forward)(x, params))
    assert out.shape == (2, 10), out.shape
    # rows are valid log-probabilities
    assert bool(jnp.allclose(jnp.sum(jnp.exp(out), axis=-1), 1.0, atol=1e-4))
    # matches a pure-XLA reference of the PyTorch forward (eval mode);
    # tolerance covers the bf16 weight/LHS quantization.
    ref = jax.block_until_ready(jax.jit(net_forward_reference)(x, torch_params))
    max_diff = float(jnp.max(jnp.abs(out - ref)))
    assert bool(jnp.allclose(out, ref, atol=3e-2, rtol=3e-2)), max_diff
    print("KERNEL_OK")
</pallas_src>

<mosaic_0001>
module attributes {stable_mosaic.version = 11 : i64} {
  func.func @_net_fused_kernel(%arg0: i32, %arg1: memref<2x48x168xbf16, #tpu.memory_space<vmem>>, %arg2: memref<168x512xbf16, #tpu.memory_space<vmem>>, %arg3: memref<1x128xf32, #tpu.memory_space<vmem>>, %arg4: memref<768x512xbf16, #tpu.memory_space<vmem>>, %arg5: memref<1x128xf32, #tpu.memory_space<vmem>>, %arg6: memref<512x50xbf16, #tpu.memory_space<vmem>>, %arg7: memref<1x50xf32, #tpu.memory_space<vmem>>, %arg8: memref<50x10xbf16, #tpu.memory_space<vmem>>, %arg9: memref<1x10xf32, #tpu.memory_space<vmem>>, %arg10: memref<8x10xf32, #tpu.memory_space<vmem>>) attributes {dimension_semantics = [#tpu.dimension_semantics<parallel>], iteration_bounds = array<i64: 1>, scalar_prefetch = 0 : i64, scratch_operands = 0 : i64, tpu.core_type = #tpu.core_type<tc>, window_params = [{transform_indices = @transform_0, window_bounds = array<i64: 2, 48, 168>}, {pipeline_mode = #tpu.pipeline_mode<synchronous>, transform_indices = @transform_1, window_bounds = array<i64: 168, 512>}, {pipeline_mode = #tpu.pipeline_mode<synchronous>, transform_indices = @transform_2, window_bounds = array<i64: 1, 128>}, {pipeline_mode = #tpu.pipeline_mode<synchronous>, transform_indices = @transform_3, window_bounds = array<i64: 768, 512>}, {pipeline_mode = #tpu.pipeline_mode<synchronous>, transform_indices = @transform_4, window_bounds = array<i64: 1, 128>}, {pipeline_mode = #tpu.pipeline_mode<synchronous>, transform_indices = @transform_5, window_bounds = array<i64: 512, 50>}, {pipeline_mode = #tpu.pipeline_mode<synchronous>, transform_indices = @transform_6, window_bounds = array<i64: 1, 50>}, {pipeline_mode = #tpu.pipeline_mode<synchronous>, transform_indices = @transform_7, window_bounds = array<i64: 50, 10>}, {pipeline_mode = #tpu.pipeline_mode<synchronous>, transform_indices = @transform_8, window_bounds = array<i64: 1, 10>}, {transform_indices = @transform_9, window_bounds = array<i64: 8, 10>}]} {
    %c0 = arith.constant 0 : index
    %c0_0 = arith.constant 0 : index
    %c0_1 = arith.constant 0 : index
    %0 = vector.load %arg1[%c0, %c0_0, %c0_1] : memref<2x48x168xbf16, #tpu.memory_space<vmem>>, vector<2x48x168xbf16>
    %1 = vector.shape_cast %0 : vector<2x48x168xbf16> to vector<96x168xbf16>
    %c0_2 = arith.constant 0 : index
    %c0_3 = arith.constant 0 : index
    %2 = vector.load %arg2[%c0_2, %c0_3] : memref<168x512xbf16, #tpu.memory_space<vmem>>, vector<168x512xbf16>
    %cst = arith.constant dense<0.000000e+00> : vector<96x512xf32>
    %3 = tpu.matmul %1, %2, %cst {dimension_numbers = #tpu.dot_dimension_numbers<[1], [0], [0], [1], [0, 0, 1, 1], [], []>} : vector<96x168xbf16>, vector<168x512xbf16>, vector<96x512xf32> -> vector<96x512xf32>
    %4 = vector.extract_strided_slice %3 {offsets = [0, 0], sizes = [96, 256], strides = [1, 1]} : vector<96x512xf32> to vector<96x256xf32>
    %5 = vector.extract_strided_slice %3 {offsets = [0, 256], sizes = [96, 256], strides = [1, 1]} : vector<96x512xf32> to vector<96x256xf32>
    %6 = arith.maximumf %4, %5 : vector<96x256xf32>
    %7 = vector.extract_strided_slice %6 {offsets = [0, 0], sizes = [96, 128], strides = [1, 1]} : vector<96x256xf32> to vector<96x128xf32>
    %8 = vector.extract_strided_slice %6 {offsets = [0, 128], sizes = [96, 128], strides = [1, 1]} : vector<96x256xf32> to vector<96x128xf32>
    %9 = arith.maximumf %7, %8 : vector<96x128xf32>
    %c0_4 = arith.constant 0 : index
    %c0_5 = arith.constant 0 : index
    %10 = vector.load %arg3[%c0_4, %c0_5] : memref<1x128xf32, #tpu.memory_space<vmem>>, vector<1x128xf32>
    %11 = vector.broadcast %10 : vector<1x128xf32> to vector<96x128xf32>
    %12 = arith.addf %9, %11 : vector<96x128xf32>
    %cst_6 = arith.constant 0.000000e+00 : f32
    %13 = vector.broadcast %cst_6 : f32 to vector<96x128xf32>
    %14 = arith.maximumf %12, %13 : vector<96x128xf32>
    %15 = arith.truncf %14 : vector<96x128xf32> to vector<96x128xbf16>
    %16 = vector.extract_strided_slice %15 {offsets = [0, 0], sizes = [48, 128], strides = [1, 1]} : vector<96x128xbf16> to vector<48x128xbf16>
    %17 = vector.shape_cast %16 : vector<48x128xbf16> to vector<8x6x128xbf16>
    %18 = vector.extract_strided_slice %15 {offsets = [48, 0], sizes = [48, 128], strides = [1, 1]} : vector<96x128xbf16> to vector<48x128xbf16>
    %19 = vector.shape_cast %18 : vector<48x128xbf16> to vector<8x6x128xbf16>
    %20 = vector.extract_strided_slice %17 {offsets = [0, 0, 0], sizes = [8, 4, 128], strides = [1, 1, 1]} : vector<8x6x128xbf16> to vector<8x4x128xbf16>
    %21 = vector.shape_cast %20 : vector<8x4x128xbf16> to vector<32x128xbf16>
    %22 = vector.extract_strided_slice %19 {offsets = [0, 0, 0], sizes = [8, 4, 128], strides = [1, 1, 1]} : vector<8x6x128xbf16> to vector<8x4x128xbf16>
    %23 = vector.shape_cast %22 : vector<8x4x128xbf16> to vector<32x128xbf16>
    %24 = vector.extract_strided_slice %17 {offsets = [0, 1, 0], sizes = [8, 4, 128], strides = [1, 1, 1]} : vector<8x6x128xbf16> to vector<8x4x128xbf16>
    %25 = vector.shape_cast %24 : vector<8x4x128xbf16> to vector<32x128xbf16>
    %26 = vector.extract_strided_slice %19 {offsets = [0, 1, 0], sizes = [8, 4, 128], strides = [1, 1, 1]} : vector<8x6x128xbf16> to vector<8x4x128xbf16>
    %27 = vector.shape_cast %26 : vector<8x4x128xbf16> to vector<32x128xbf16>
    %28 = vector.extract_strided_slice %17 {offsets = [0, 2, 0], sizes = [8, 4, 128], strides = [1, 1, 1]} : vector<8x6x128xbf16> to vector<8x4x128xbf16>
    %29 = vector.shape_cast %28 : vector<8x4x128xbf16> to vector<32x128xbf16>
    %30 = vector.extract_strided_slice %19 {offsets = [0, 2, 0], sizes = [8, 4, 128], strides = [1, 1, 1]} : vector<8x6x128xbf16> to vector<8x4x128xbf16>
    %31 = vector.shape_cast %30 : vector<8x4x128xbf16> to vector<32x128xbf16>
    %32 = tpu.concatenate %21, %23, %25, %27, %29, %31 in 1 : vector<32x128xbf16>, vector<32x128xbf16>, vector<32x128xbf16>, vector<32x128xbf16>, vector<32x128xbf16>, vector<32x128xbf16> -> vector<32x768xbf16>
    %c0_7 = arith.constant 0 : index
    %c0_8 = arith.constant 0 : index
    %33 = vector.load %arg4[%c0_7, %c0_8] : memref<768x512xbf16, #tpu.memory_space<vmem>>, vector<768x512xbf16>
    %cst_9 = arith.constant dense<0.000000e+00> : vector<32x512xf32>
    %34 = tpu.matmul %32, %33, %cst_9 {dimension_numbers = #tpu.dot_dimension_numbers<[1], [0], [0], [1], [0, 0, 1, 1], [], []>} : vector<32x768xbf16>, vector<768x512xbf16>, vector<32x512xf32> -> vector<32x512xf32>
    %35 = vector.extract_strided_slice %34 {offsets = [0, 0], sizes = [32, 256], strides = [1, 1]} : vector<32x512xf32> to vector<32x256xf32>
    %36 = vector.extract_strided_slice %34 {offsets = [0, 256], sizes = [32, 256], strides = [1, 1]} : vector<32x512xf32> to vector<32x256xf32>
    %37 = arith.maximumf %35, %36 : vector<32x256xf32>
    %38 = vector.extract_strided_slice %37 {offsets = [0, 0], sizes = [32, 128], strides = [1, 1]} : vector<32x256xf32> to vector<32x128xf32>
    %39 = vector.extract_strided_slice %37 {offsets = [0, 128], sizes = [32, 128], strides = [1, 1]} : vector<32x256xf32> to vector<32x128xf32>
    %40 = arith.maximumf %38, %39 : vector<32x128xf32>
    %c0_10 = arith.constant 0 : index
    %c0_11 = arith.constant 0 : index
    %41 = vector.load %arg5[%c0_10, %c0_11] : memref<1x128xf32, #tpu.memory_space<vmem>>, vector<1x128xf32>
    %42 = vector.broadcast %41 : vector<1x128xf32> to vector<32x128xf32>
    %43 = arith.addf %40, %42 : vector<32x128xf32>
    %cst_12 = arith.constant 0.000000e+00 : f32
    %44 = vector.broadcast %cst_12 : f32 to vector<32x128xf32>
    %45 = arith.maximumf %43, %44 : vector<32x128xf32>
    %46 = arith.truncf %45 : vector<32x128xf32> to vector<32x128xbf16>
    %47 = vector.shape_cast %46 : vector<32x128xbf16> to vector<8x4x128xbf16>
    %48 = vector.extract_strided_slice %47 {offsets = [0, 0, 0], sizes = [8, 1, 128], strides = [1, 1, 1]} : vector<8x4x128xbf16> to vector<8x1x128xbf16>
    %49 = vector.shape_cast %48 : vector<8x1x128xbf16> to vector<8x128xbf16>
    %50 = vector.extract_strided_slice %47 {offsets = [0, 1, 0], sizes = [8, 1, 128], strides = [1, 1, 1]} : vector<8x4x128xbf16> to vector<8x1x128xbf16>
    %51 = vector.shape_cast %50 : vector<8x1x128xbf16> to vector<8x128xbf16>
    %52 = vector.extract_strided_slice %47 {offsets = [0, 2, 0], sizes = [8, 1, 128], strides = [1, 1, 1]} : vector<8x4x128xbf16> to vector<8x1x128xbf16>
    %53 = vector.shape_cast %52 : vector<8x1x128xbf16> to vector<8x128xbf16>
    %54 = vector.extract_strided_slice %47 {offsets = [0, 3, 0], sizes = [8, 1, 128], strides = [1, 1, 1]} : vector<8x4x128xbf16> to vector<8x1x128xbf16>
    %55 = vector.shape_cast %54 : vector<8x1x128xbf16> to vector<8x128xbf16>
    %56 = tpu.concatenate %49, %51, %53, %55 in 1 : vector<8x128xbf16>, vector<8x128xbf16>, vector<8x128xbf16>, vector<8x128xbf16> -> vector<8x512xbf16>
    %c0_13 = arith.constant 0 : index
    %c0_14 = arith.constant 0 : index
    %57 = vector.load %arg6[%c0_13, %c0_14] : memref<512x50xbf16, #tpu.memory_space<vmem>>, vector<512x50xbf16>
    %cst_15 = arith.constant dense<0.000000e+00> : vector<8x50xf32>
    %58 = tpu.matmul %56, %57, %cst_15 {dimension_numbers = #tpu.dot_dimension_numbers<[1], [0], [0], [1], [0, 0, 1, 1], [], []>} : vector<8x512xbf16>, vector<512x50xbf16>, vector<8x50xf32> -> vector<8x50xf32>
    %c0_16 = arith.constant 0 : index
    %c0_17 = arith.constant 0 : index
    %59 = vector.load %arg7[%c0_16, %c0_17] : memref<1x50xf32, #tpu.memory_space<vmem>>, vector<1x50xf32>
    %60 = vector.broadcast %59 : vector<1x50xf32> to vector<8x50xf32>
    %61 = arith.addf %58, %60 : vector<8x50xf32>
    %cst_18 = arith.constant 0.000000e+00 : f32
    %62 = vector.broadcast %cst_18 : f32 to vector<8x50xf32>
    %63 = arith.maximumf %61, %62 : vector<8x50xf32>
    %64 = arith.truncf %63 : vector<8x50xf32> to vector<8x50xbf16>
    %c0_19 = arith.constant 0 : index
    %c0_20 = arith.constant 0 : index
    %65 = vector.load %arg8[%c0_19, %c0_20] : memref<50x10xbf16, #tpu.memory_space<vmem>>, vector<50x10xbf16>
    %cst_21 = arith.constant dense<0.000000e+00> : vector<8x10xf32>
    %66 = tpu.matmul %64, %65, %cst_21 {dimension_numbers = #tpu.dot_dimension_numbers<[1], [0], [0], [1], [0, 0, 1, 1], [], []>} : vector<8x50xbf16>, vector<50x10xbf16>, vector<8x10xf32> -> vector<8x10xf32>
    %c0_22 = arith.constant 0 : index
    %c0_23 = arith.constant 0 : index
    %67 = vector.load %arg9[%c0_22, %c0_23] : memref<1x10xf32, #tpu.memory_space<vmem>>, vector<1x10xf32>
    %68 = vector.broadcast %67 : vector<1x10xf32> to vector<8x10xf32>
    %69 = arith.addf %66, %68 : vector<8x10xf32>
    %cst_24 = arith.constant dense<0xFF800000> : vector<8xf32>
    %70 = vector.multi_reduction <maximumf>, %69, %cst_24 [1] : vector<8x10xf32> to vector<8xf32>
    %71 = vector.shape_cast %70 : vector<8xf32> to vector<8x1xf32>
    %72 = vector.broadcast %71 : vector<8x1xf32> to vector<8x10xf32>
    %73 = arith.subf %69, %72 : vector<8x10xf32>
    %74 = math.exp %73 : vector<8x10xf32>
    %cst_25 = arith.constant dense<0.000000e+00> : vector<8xf32>
    %75 = vector.multi_reduction <add>, %74, %cst_25 [1] : vector<8x10xf32> to vector<8xf32>
    %76 = vector.shape_cast %75 : vector<8xf32> to vector<8x1xf32>
    %77 = math.log %76 : vector<8x1xf32>
    %78 = vector.broadcast %77 : vector<8x1xf32> to vector<8x10xf32>
    %79 = arith.subf %73, %78 : vector<8x10xf32>
    %c0_26 = arith.constant 0 : index
    %c0_27 = arith.constant 0 : index
    %80 = vector.load %arg10[%c0_26, %c0_27] : memref<8x10xf32, #tpu.memory_space<vmem>>, vector<8x10xf32>
    tpu.vector_store %arg10[%c0_26, %c0_27], %79 {strides = array<i32>} : memref<8x10xf32, #tpu.memory_space<vmem>>, vector<8x10xf32>,
    return
  }
  func.func @transform_0(%arg0: i32) -> (i32, i32, i32) {
    %c0_i32 = arith.constant 0 : i32
    %c0_i32_0 = arith.constant 0 : i32
    %c0_i32_1 = arith.constant 0 : i32
    return %c0_i32, %arg0, %c0_i32_0 : i32, i32, i32
  }
  func.func @transform_1(%arg0: i32) -> (i32, i32) {
    %c0_i32 = arith.constant 0 : i32
    %c0_i32_0 = arith.constant 0 : i32
    %c0_i32_1 = arith.constant 0 : i32
    return %c0_i32, %c0_i32_0 : i32, i32
  }
  func.func @transform_2(%arg0: i32) -> (i32, i32) {
    %c0_i32 = arith.constant 0 : i32
    %c0_i32_0 = arith.constant 0 : i32
    %c0_i32_1 = arith.constant 0 : i32
    return %c0_i32, %c0_i32_0 : i32, i32
  }
  func.func @transform_3(%arg0: i32) -> (i32, i32) {
    %c0_i32 = arith.constant 0 : i32
    %c0_i32_0 = arith.constant 0 : i32
    %c0_i32_1 = arith.constant 0 : i32
    return %c0_i32, %c0_i32_0 : i32, i32
  }
  func.func @transform_4(%arg0: i32) -> (i32, i32) {
    %c0_i32 = arith.constant 0 : i32
    %c0_i32_0 = arith.constant 0 : i32
    %c0_i32_1 = arith.constant 0 : i32
    return %c0_i32, %c0_i32_0 : i32, i32
  }
  func.func @transform_5(%arg0: i32) -> (i32, i32) {
    %c0_i32 = arith.constant 0 : i32
    %c0_i32_0 = arith.constant 0 : i32
    %c0_i32_1 = arith.constant 0 : i32
    return %c0_i32, %c0_i32_0 : i32, i32
  }
  func.func @transform_6(%arg0: i32) -> (i32, i32) {
    %c0_i32 = arith.constant 0 : i32
    %c0_i32_0 = arith.constant 0 : i32
    %c0_i32_1 = arith.constant 0 : i32
    return %c0_i32, %c0_i32_0 : i32, i32
  }
  func.func @transform_7(%arg0: i32) -> (i32, i32) {
    %c0_i32 = arith.constant 0 : i32
    %c0_i32_0 = arith.constant 0 : i32
    %c0_i32_1 = arith.constant 0 : i32
    return %c0_i32, %c0_i32_0 : i32, i32
  }
  func.func @transform_8(%arg0: i32) -> (i32, i32) {
    %c0_i32 = arith.constant 0 : i32
    %c0_i32_0 = arith.constant 0 : i32
    %c0_i32_1 = arith.constant 0 : i32
    return %c0_i32, %c0_i32_0 : i32, i32
  }
  func.func @transform_9(%arg0: i32) -> (i32, i32) {
    %c0_i32 = arith.constant 0 : i32
    %c0_i32_0 = arith.constant 0 : i32
    return %arg0, %c0_i32 : i32, i32
  }
}

</mosaic_0001>

<bundles_post_ra>
// kernel: net_forward.1
= control target key start
LH: loop header
LB: loop body
LE: loop exit
PB: predicated region body
PF: predicated region fallthrough
CT: control target
= control target key end

     0   :  { %vm351_vm0 = vcmask 326656   ;;  %vm370_vm1 = vcmask 1043456   ;;  %vm942_vm2 = vsmask.f32 256  ;;  %vm943_vm3 = vsmask.f32 1284  ;;  %s6305_s1 = inlined_call_operand.vmem [shape: bf16[168,512], index: 1, kind: input, shape index: {}]   ;;  %s6306_s0 = inlined_call_operand.vmem [shape: bf16[2,48,168], index: 0, kind: input, shape index: {}]   ;;  %s6307_s3 = inlined_call_operand.vmem [shape: bf16[768,512], index: 3, kind: input, shape index: {}]   ;;  %s6308_s2 = inlined_call_operand.vmem [shape: f32[1,128], index: 2, kind: input, shape index: {}]   ;;  %s6309_s5 = inlined_call_operand.vmem [shape: bf16[512,50], index: 5, kind: input, shape index: {}]   ;;  %s6310_s7 = inlined_call_operand.vmem [shape: bf16[50,10], index: 7, kind: input, shape index: {}]   ;;  %s6311_s4 = inlined_call_operand.vmem [shape: f32[1,128], index: 4, kind: input, shape index: {}]   ;;  %s6312_s6 = inlined_call_operand.vmem [shape: f32[1,50], index: 6, kind: input, shape index: {}]   ;;  %s6313_s8 = inlined_call_operand.vmem [shape: f32[1,10], index: 8, kind: input, shape index: {}]   ;;  %s6314_s9 = inlined_call_operand.vmem [shape: f32[8,10], index: 9, kind: output, shape index: {}]  }
   0x1   :  { %v4361_v0 = vld [vmem:[%s6305_s1 + $0xe4] ss:$16 sps:$4 sm:$0xff]   ;;  %v4363_v1 = vld [vmem:[%s6305_s1 + $0xec] ss:$16 sps:$4 sm:$0xff]   ;;  %v4365_v2 = vld [vmem:[%s6305_s1 + $0xe0] ss:$16 sps:$4 sm:$0xff]  }
   0x2   :  { %383 = vmatprep.subr.bf16.mxu0 %v4361_v0  ;;  %v4366_v3 = vld [vmem:[%s6305_s1 + $0xe8] ss:$16 sps:$4 sm:$0xff]   ;;  %476 = vmatprep.subr.bf16.mxu1 %v4363_v1  ;;  %v4367_v4 = vld [vmem:[%s6305_s1 + $0xc4] ss:$16 sps:$4 sm:$0xff]   ;;  %v4369_v5 = vld [vmem:[%s6305_s1 + $0xcc] ss:$16 sps:$4 sm:$0xff]  }
   0x3   :  { %384 = vmatpush1.bf16.msra.mxu0 %v4365_v2  ;;  %477 = vmatpush1.bf16.msra.mxu1 %v4366_v3  ;;  %v4371_v6 = vld [vmem:[%s6305_s1 + $0xc0] ss:$16 sps:$4 sm:$0xff]   ;;  %v4372_v7 = vld [vmem:[%s6305_s1 + $0xc8] ss:$16 sps:$4 sm:$0xff]   ;;  %v4373_v8 = vld [vmem:[%s6305_s1 + $0xa4] ss:$16 sps:$4 sm:$0xff]  }
   0x4   :  { %385 = vmatprep.subr.bf16.mxu0 %v4367_v4  ;;  %478 = vmatprep.subr.bf16.mxu1 %v4369_v5  ;;  %v4375_v9 = vld [vmem:[%s6305_s1 + $0xac] ss:$16 sps:$4 sm:$0xff]   ;;  %v4377_v10 = vld [vmem:[%s6305_s1 + $0xa0] ss:$16 sps:$4 sm:$0xff]   ;;  %v4378_v11 = vld [vmem:[%s6305_s1 + $0xa8] ss:$16 sps:$4 sm:$0xff]  }
   0x5   :  { %v4379_v12 = vld [vmem:[%s6305_s1 + $0x84] ss:$16 sps:$4 sm:$0xff]   ;;  %v4381_v13 = vld [vmem:[%s6305_s1 + $0x8c] ss:$16 sps:$4 sm:$0xff]   ;;  %v4383_v14 = vld [vmem:[%s6305_s1 + $0x80] ss:$16 sps:$4 sm:$0xff]  }
   0x6   :  { %v4384_v15 = vld [vmem:[%s6305_s1 + $0x88] ss:$16 sps:$4 sm:$0xff]   ;;  %v4385_v16 = vld [vmem:[%s6305_s1 + $0x64] ss:$16 sps:$4 sm:$0xff]   ;;  %v4387_v17 = vld [vmem:[%s6305_s1 + $0x6c] ss:$16 sps:$4 sm:$0xff]  }
   0x7   :  { %386 = vmatpush1.bf16.msra.mxu0 %v4371_v6  ;;  %479 = vmatpush1.bf16.msra.mxu1 %v4372_v7  ;;  %v4389_v18 = vld [vmem:[%s6305_s1 + $0x60] ss:$16 sps:$4 sm:$0xff]   ;;  %v4390_v19 = vld [vmem:[%s6305_s1 + $0x68] ss:$16 sps:$4 sm:$0xff]   ;;  %v4391_v20 = vld [vmem:[%s6305_s1 + $0x44] ss:$16 sps:$4 sm:$0xff]  }
   0x8   :  { %387 = vmatprep.subr.bf16.mxu0 %v4373_v8  ;;  %480 = vmatprep.subr.bf16.mxu1 %v4375_v9  ;;  %v4393_v21 = vld [vmem:[%s6305_s1 + $0x4c] ss:$16 sps:$4 sm:$0xff]   ;;  %v4395_v22 = vld [vmem:[%s6305_s1 + $0x40] ss:$16 sps:$4 sm:$0xff]   ;;  %v4396_v23 = vld [vmem:[%s6305_s1 + $0x48] ss:$16 sps:$4 sm:$0xff]  }
   0x9   :  { %v4397_v24 = vld [vmem:[%s6305_s1 + $0x24] ss:$16 sps:$4 sm:$0xff]   ;;  %v4399_v25 = vld [vmem:[%s6305_s1 + $0x2c] ss:$16 sps:$4 sm:$0xff]   ;;  %v4401_v26 = vld [vmem:[%s6305_s1 + $0x20] ss:$16 sps:$4 sm:$0xff]  }
   0xa   :  { %v4402_v27 = vld [vmem:[%s6305_s1 + $0x28] ss:$16 sps:$4 sm:$0xff]   ;;  %v4403_v28 = vld [vmem:[%s6305_s1 + $0x4] ss:$16 sps:$4 sm:$0xff]   ;;  %v4405_v29 = vld [vmem:[%s6305_s1 + $0xc] ss:$16 sps:$4 sm:$0xff]  }
   0xb   :  { %388 = vmatpush1.bf16.msra.mxu0 %v4377_v10  ;;  %481 = vmatpush1.bf16.msra.mxu1 %v4378_v11  ;;  %v85_v30 = vld [vmem:[%s6305_s1 + $0x140] sm:$0xff]  ;;  %v86_v31 = vld [vmem:[%s6305_s1 + $0x148] sm:$0xff]  ;;  %v4428_v50 = vld [vmem:[%s6306_s0 + $0x14] ss:$8 sps:$4 sm:$0xff]   ;;  %vm945_vm5 = vsmask.f32 2312 }
   0xc   :  { %389 = vmatprep.subr.bf16.mxu0 %v4379_v12  ;;  %482 = vmatprep.subr.bf16.mxu1 %v4381_v13  ;;  %v4407_v32 = vld [vmem:[%s6305_s1] ss:$16 sps:$4 sm:$0xff]   ;;  %v4408_v33 = vld [vmem:[%s6305_s1 + $0x8] ss:$16 sps:$4 sm:$0xff]   ;;  %v3998_v34 = vcombine.high %v85_v30, %v85_v30  ;;  %v4427_v35 = vld [vmem:[%s6306_s0 + $0x4] ss:$8 sps:$4 sm:$0xff]   ;;  %v4000_v36 = vcombine.high %v86_v31, %v86_v31  ;;  %v3997_v37 = vcombine.low %v85_v30, %v85_v30 }
   0xd   :  { %v3999_v38 = vcombine.low %v86_v31, %v86_v31  ;;  %4002 = vmatprep.mubr.msk.bf16.mxu0 %vm351_vm0, %v4427_v35  ;;  %4009 = vmatprep.mubr.msk.bf16.mxu1 %vm351_vm0, %v4427_v35  ;;  %v4413_v39 = vld [vmem:[%s6305_s1 + $0x124] ss:$16 sps:$4 sm:$0xff]   ;;  %v4415_v42 = vld [vmem:[%s6305_s1 + $0x12c] ss:$16 sps:$4 sm:$0xff]   ;;  %v4417_v43 = vld [vmem:[%s6305_s1 + $0x120] ss:$16 sps:$4 sm:$0xff]  }
   0xe   :  { %v372_v40 = vsel %vm370_vm1, %v3997_v37, 0  ;;  %v4418_v44 = vld [vmem:[%s6305_s1 + $0x128] ss:$16 sps:$4 sm:$0xff]   ;;  %v4419_v45 = vld [vmem:[%s6305_s1 + $0x104] ss:$16 sps:$4 sm:$0xff]   ;;  %vm944_vm4 = vmor %vm942_vm2, %vm943_vm3  ;;  %vm3432_vm2 = vcmask 1042434  }
   0xf   :  { %390 = vmatpush1.bf16.msra.mxu0 %v4383_v14  ;;  %483 = vmatpush1.bf16.msra.mxu1 %v4384_v15  ;;  %v378_v41 = vsel %vm370_vm1, %v3999_v38, 0  ;;  %v4421_v46 = vld [vmem:[%s6305_s1 + $0x10c] ss:$16 sps:$4 sm:$0xff]   ;;  %v4423_v47 = vld [vmem:[%s6305_s1 + $0x100] ss:$16 sps:$4 sm:$0xff]   ;;  %vm946_vm6 = vmor %vm944_vm4, %vm945_vm5  ;;  %vm3435_vm3 = vcmask 1043459  }
  0x10   :  { %391 = vmatprep.subr.bf16.mxu0 %v4385_v16  ;;  %484 = vmatprep.subr.bf16.mxu1 %v4387_v17  ;;  %v4424_v48 = vld [vmem:[%s6305_s1 + $0x108] ss:$16 sps:$4 sm:$0xff]   ;;  %v4431_v52 = vld [vmem:[%s6306_s0 + $0x24] ss:$8 sps:$4 sm:$0xff]   ;;  %v4434_v54 = vld [vmem:[%s6306_s0 + $0x34] ss:$8 sps:$4 sm:$0xff]  }
  0x11   :  { %v4425_v49 = vld [vmem:[%s6306_s0] ss:$8 sps:$4 sm:$0xff]   ;;  %v4430_v51 = vld [vmem:[%s6306_s0 + $0x10] ss:$8 sps:$4 sm:$0xff]   ;;  %v4437_v56 = vld [vmem:[%s6306_s0 + $0x44] ss:$8 sps:$4 sm:$0xff]  }
  0x12   :  { %v4433_v53 = vld [vmem:[%s6306_s0 + $0x20] ss:$8 sps:$4 sm:$0xff]   ;;  %v4436_v55 = vld [vmem:[%s6306_s0 + $0x30] ss:$8 sps:$4 sm:$0xff]   ;;  %v4440_v58 = vld [vmem:[%s6306_s0 + $0x54] ss:$8 sps:$4 sm:$0xff]  }
  0x13   :  { %392 = vmatpush1.bf16.msra.mxu0 %v4389_v18  ;;  %485 = vmatpush1.bf16.msra.mxu1 %v4390_v19  ;;  %v4439_v57 = vld [vmem:[%s6306_s0 + $0x40] ss:$8 sps:$4 sm:$0xff]   ;;  %v4442_v59 = vld [vmem:[%s6306_s0 + $0x50] ss:$8 sps:$4 sm:$0xff]   ;;  %v4445_v60 = vld [vmem:[%s6307_s3 + $0xe4] ss:$16 sps:$4 sm:$0xff]  }
  0x14   :  { %393 = vmatprep.subr.bf16.mxu0 %v4391_v20  ;;  %486 = vmatprep.subr.bf16.mxu1 %v4393_v21  ;;  %v4443_v61 = vld [vmem:[%s6307_s3 + $0xe0] ss:$16 sps:$4 sm:$0xff]   ;;  %v4448_v62 = vld [vmem:[%s6307_s3 + $0xc4] ss:$16 sps:$4 sm:$0xff]   ;;  %vm947_vm7 = vsmask.f32 3340 }
  0x15   :  { %v4446_v63 = vld [vmem:[%s6307_s3 + $0xc0] ss:$16 sps:$4 sm:$0xff]   ;;  %v4451_v0 = vld [vmem:[%s6307_s3 + $0x2e4] ss:$16 sps:$4 sm:$0xff]   ;;  %vm948_vm8 = vmor %vm946_vm6, %vm947_vm7  ;;  %vm949_vm9 = vsmask.f32 4368 }
  0x16   :  { %v4449_v1 = vld [vmem:[%s6307_s3 + $0x2e0] ss:$16 sps:$4 sm:$0xff]   ;;  %v4454_v2 = vld [vmem:[%s6307_s3 + $0xa4] ss:$16 sps:$4 sm:$0xff]   ;;  %vm950_vm10 = vmor %vm948_vm8, %vm949_vm9  ;;  %vm951_vm11 = vsmask.f32 5396 }
  0x17   :  { %394 = vmatpush1.bf16.msra.mxu0 %v4395_v22  ;;  %487 = vmatpush1.bf16.msra.mxu1 %v4396_v23  ;;  %v4452_v3 = vld [vmem:[%s6307_s3 + $0xa0] ss:$16 sps:$4 sm:$0xff]   ;;  %v4457_v4 = vld [vmem:[%s6307_s3 + $0x2c4] ss:$16 sps:$4 sm:$0xff]   ;;  %vm5209_vm12 = vmor %vm950_vm10, %vm951_vm11  ;;  %vm953_vm13 = vsmask.f32 6424 }
  0x18   :  { %395 = vmatprep.subr.bf16.mxu0 %v4397_v24  ;;  %488 = vmatprep.subr.bf16.mxu1 %v4399_v25  ;;  %v4455_v5 = vld [vmem:[%s6307_s3 + $0x2c0] ss:$16 sps:$4 sm:$0xff]   ;;  %v4460_v6 = vld [vmem:[%s6307_s3 + $0x84] ss:$16 sps:$4 sm:$0xff]   ;;  %vm955_vm14 = vsmask.f32 7452  ;;  %vm954_vm15 = vmor %vm5209_vm12, %vm953_vm13 }
  0x19   :  { %v4458_v7 = vld [vmem:[%s6307_s3 + $0x80] ss:$16 sps:$4 sm:$0xff]   ;;  %v4463_v8 = vld [vmem:[%s6307_s3 + $0x2a4] ss:$16 sps:$4 sm:$0xff]   ;;  %vm3438_vm4 = vcmask 1044484   ;;  %vm3441_vm5 = vcmask 1045509  }
  0x1a   :  { %v4461_v9 = vld [vmem:[%s6307_s3 + $0x2a0] ss:$16 sps:$4 sm:$0xff]   ;;  %v4466_v10 = vld [vmem:[%s6307_s3 + $0x64] ss:$16 sps:$4 sm:$0xff]   ;;  %vm3444_vm6 = vcmask 1046534   ;;  %vm3447_vm7 = vcmask 1047559  }
  0x1b   :  { %396 = vmatpush1.bf16.msra.mxu0 %v4401_v26  ;;  %489 = vmatpush1.bf16.msra.mxu1 %v4402_v27  ;;  %v4464_v11 = vld [vmem:[%s6307_s3 + $0x60] ss:$16 sps:$4 sm:$0xff]   ;;  %v4469_v12 = vld [vmem:[%s6307_s3 + $0x284] ss:$16 sps:$4 sm:$0xff]   ;;  %vm3883_vm8 = vcmask 1040384   ;;  %vm4774_vm9 = vmmov 0  }
  0x1c   :  { %397 = vmatprep.subr.bf16.mxu0 %v4403_v28  ;;  %490 = vmatprep.subr.bf16.mxu1 %v4405_v29  ;;  %v4467_v13 = vld [vmem:[%s6307_s3 + $0x280] ss:$16 sps:$4 sm:$0xff]   ;;  %v4472_v14 = vld [vmem:[%s6307_s3 + $0x44] ss:$16 sps:$4 sm:$0xff]   ;;  %vm3879_vm10 = vcmask 408576   ;;  %vm3927_vm11 = vcmask 80896  }
  0x1d   :  { %v4470_v15 = vld [vmem:[%s6307_s3 + $0x40] ss:$16 sps:$4 sm:$0xff]   ;;  %v4475_v16 = vld [vmem:[%s6307_s3 + $0x264] ss:$16 sps:$4 sm:$0xff]  }
  0x1e   :  { %v4473_v17 = vld [vmem:[%s6307_s3 + $0x260] ss:$16 sps:$4 sm:$0xff]   ;;  %v4478_v18 = vld [vmem:[%s6307_s3 + $0x24] ss:$16 sps:$4 sm:$0xff]  }
  0x1f   :  { %398 = vmatpush1.bf16.msra.mxu0 %v4407_v32  ;;  %491 = vmatpush1.bf16.msra.mxu1 %v4408_v33  ;;  %v4476_v19 = vld [vmem:[%s6307_s3 + $0x20] ss:$16 sps:$4 sm:$0xff]   ;;  %v4481_v20 = vld [vmem:[%s6307_s3 + $0x244] ss:$16 sps:$4 sm:$0xff]  }
  0x20   :  { %4001 = vmatprep.subr.msk.bf16.mxu0 %vm370_vm1, %v3998_v34  ;;  %4008 = vmatprep.subr.msk.bf16.mxu1 %vm370_vm1, %v4000_v36  ;;  %v4479_v21 = vld [vmem:[%s6307_s3 + $0x240] ss:$16 sps:$4 sm:$0xff]   ;;  %v4484_v22 = vld [vmem:[%s6307_s3 + $0x4] ss:$16 sps:$4 sm:$0xff]   ;;  %vm3429_vm1 = vcmask 1041409  }
  0x21   :  { %v4482_v23 = vld [vmem:[%s6307_s3] ss:$16 sps:$4 sm:$0xff]   ;;  %v4487_v24 = vld [vmem:[%s6307_s3 + $0x224] ss:$16 sps:$4 sm:$0xff]  }
  0x22   :  { %v4485_v25 = vld [vmem:[%s6307_s3 + $0x220] ss:$16 sps:$4 sm:$0xff]   ;;  %v4490_v26 = vld [vmem:[%s6307_s3 + $0x1e4] ss:$16 sps:$4 sm:$0xff]  }
  0x23   :  { %410 = vmatpush2.bf16.msra.mxu0 %v372_v40  ;;  %503 = vmatpush2.bf16.msra.mxu1 %v378_v41  ;;  %v4488_v27 = vld [vmem:[%s6307_s3 + $0x1e0] ss:$16 sps:$4 sm:$0xff]   ;;  %v4493_v28 = vld [vmem:[%s6307_s3 + $0x204] ss:$16 sps:$4 sm:$0xff]  }
  0x24   :  { %411 = vmatprep.subr.bf16.mxu0 %v4413_v39  ;;  %504 = vmatprep.subr.bf16.mxu1 %v4415_v42  ;;  %v4491_v29 = vld [vmem:[%s6307_s3 + $0x200] ss:$16 sps:$4 sm:$0xff]   ;;  %v4496_v30 = vld [vmem:[%s6307_s3 + $0x1c4] ss:$16 sps:$4 sm:$0xff]  }
  0x25   :  { %v4494_v31 = vld [vmem:[%s6307_s3 + $0x1c0] ss:$16 sps:$4 sm:$0xff]   ;;  %v4499_v32 = vld [vmem:[%s6307_s3 + $0x3e4] ss:$16 sps:$4 sm:$0xff]  }
  0x26   :  { %v4497_v33 = vld [vmem:[%s6307_s3 + $0x3e0] ss:$16 sps:$4 sm:$0xff]   ;;  %v4502_v34 = vld [vmem:[%s6307_s3 + $0x1a4] ss:$16 sps:$4 sm:$0xff]  }
  0x27   :  { %412 = vmatpush2.bf16.msra.mxu0 %v4417_v43  ;;  %505 = vmatpush2.bf16.msra.mxu1 %v4418_v44  ;;  %v4500_v35 = vld [vmem:[%s6307_s3 + $0x1a0] ss:$16 sps:$4 sm:$0xff]   ;;  %v4505_v36 = vld [vmem:[%s6307_s3 + $0x3c4] ss:$16 sps:$4 sm:$0xff]  }
  0x28   :  { %413 = vmatprep.subr.bf16.mxu0 %v4419_v45  ;;  %506 = vmatprep.subr.bf16.mxu1 %v4421_v46  ;;  %v4503_v37 = vld [vmem:[%s6307_s3 + $0x3c0] ss:$16 sps:$4 sm:$0xff]   ;;  %v4508_v38 = vld [vmem:[%s6307_s3 + $0x184] ss:$16 sps:$4 sm:$0xff]  }
  0x29   :  { %v4506_v39 = vld [vmem:[%s6307_s3 + $0x180] ss:$16 sps:$4 sm:$0xff]   ;;  %v4511_v40 = vld [vmem:[%s6307_s3 + $0x3a4] ss:$16 sps:$4 sm:$0xff]  }
  0x2a   :  { %v4509_v41 = vld [vmem:[%s6307_s3 + $0x3a0] ss:$16 sps:$4 sm:$0xff]   ;;  %v4514_v42 = vld [vmem:[%s6307_s3 + $0x164] ss:$16 sps:$4 sm:$0xff]  }
  0x2b   :  { %414 = vmatpush2.bf16.msra.mxu0 %v4423_v47  ;;  %507 = vmatpush2.bf16.msra.mxu1 %v4424_v48  ;;  %v4512_v43 = vld [vmem:[%s6307_s3 + $0x160] ss:$16 sps:$4 sm:$0xff]   ;;  %v4517_v44 = vld [vmem:[%s6307_s3 + $0x384] ss:$16 sps:$4 sm:$0xff]  }
  0x2c   :  { %2981 = vmatprep.subr.bf16.mxu0 %v4445_v60  ;;  %3034 = vmatprep.subr.bf16.mxu1 %v4451_v0  ;;  %v4515_v45 = vld [vmem:[%s6307_s3 + $0x380] ss:$16 sps:$4 sm:$0xff]   ;;  %v4520_v46 = vld [vmem:[%s6307_s3 + $0x144] ss:$16 sps:$4 sm:$0xff]  }
  0x2d   :  { %v4518_v47 = vld [vmem:[%s6307_s3 + $0x140] ss:$16 sps:$4 sm:$0xff]   ;;  %v4523_v48 = vld [vmem:[%s6307_s3 + $0x364] ss:$16 sps:$4 sm:$0xff]  }
  0x2e   :  { %416 = vmatmul.mubr.bf16.vlgmr.msra.gmra.mxu0 %v4425_v49  ;;  %509 = vmatmul.mubr.bf16.vlgmr.msra.gmra.mxu1 %v4425_v49  ;;  %v4521_v49 = vld [vmem:[%s6307_s3 + $0x360] ss:$16 sps:$4 sm:$0xff]   ;;  %v4541_v60 = vld [vmem:[%s6307_s3 + $0x304] ss:$16 sps:$4 sm:$0xff]  }
  0x2f   :  { %4003 = vmatprep.mubr.msk.bf16.mxu0 %vm351_vm0, %v4428_v50  ;;  %4010 = vmatprep.mubr.msk.bf16.mxu1 %vm351_vm0, %v4428_v50  ;;  %v4526_v50 = vld [vmem:[%s6307_s3 + $0x124] ss:$16 sps:$4 sm:$0xff]  }
  0x30   :  { %2982 = vmatpush1.bf16.msra.mxu0 %v4443_v61  ;;  %3035 = vmatpush1.bf16.msra.mxu1 %v4449_v1  ;;  %v4547_v61 = vld [vmem:[%s6307_s3 + $0xec] ss:$16 sps:$4 sm:$0xff]  }
  0x31   :  { %2983 = vmatprep.subr.bf16.mxu0 %v4448_v62  ;;  %3036 = vmatprep.subr.bf16.mxu1 %v4457_v4 }
  0x34   :  { %2984 = vmatpush1.bf16.msra.mxu0 %v4446_v63  ;;  %3037 = vmatpush1.bf16.msra.mxu1 %v4455_v5 }
  0x35   :  { %2985 = vmatprep.subr.bf16.mxu0 %v4454_v2  ;;  %3038 = vmatprep.subr.bf16.mxu1 %v4463_v8  ;;  %v649_v8 = vlaneseq }
  0x36   :  { %426 = vmatmul.mubr.bf16.gmra.mxu0 %v4430_v51  ;;  %519 = vmatmul.mubr.bf16.gmra.mxu1 %v4430_v51  ;;  %v4524_v51 = vld [vmem:[%s6307_s3 + $0x120] ss:$16 sps:$4 sm:$0xff]  }
  0x37   :  { %4004 = vmatprep.mubr.msk.bf16.mxu0 %vm351_vm0, %v4431_v52  ;;  %4011 = vmatprep.mubr.msk.bf16.mxu1 %vm351_vm0, %v4431_v52  ;;  %v4529_v52 = vld [vmem:[%s6307_s3 + $0x344] ss:$16 sps:$4 sm:$0xff]  }
  0x38   :  { %2986 = vmatpush1.bf16.msra.mxu0 %v4452_v3  ;;  %3039 = vmatpush1.bf16.msra.mxu1 %v4461_v9 }
  0x39   :  { %2987 = vmatprep.subr.bf16.mxu0 %v4460_v6  ;;  %3040 = vmatprep.subr.bf16.mxu1 %v4469_v12  ;;  %v4771_v6 = vmov 1966171168  }
  0x3c   :  { %2988 = vmatpush1.bf16.msra.mxu0 %v4458_v7  ;;  %3041 = vmatpush1.bf16.msra.mxu1 %v4467_v13  ;;  %v647_v7 = vunpack.c.l.s4 %v4771_v6 }
  0x3d   :  { %2989 = vmatprep.subr.bf16.mxu0 %v4466_v10  ;;  %3042 = vmatprep.subr.bf16.mxu1 %v4475_v16  ;;  %v5200_v10 = vld [vmem:[%s6308_s2] ss:$0 sm:$0xff]  ;;  %v5202_v16 = vshrl.u32 %v649_v8, 7 }
  0x3e   :  { %436 = vmatmul.mubr.bf16.gmra.mxu0 %v4433_v53  ;;  %529 = vmatmul.mubr.bf16.gmra.mxu1 %v4433_v53  ;;  %v4527_v53 = vld [vmem:[%s6307_s3 + $0x340] ss:$16 sps:$4 sm:$0xff]  }
  0x3f   :  { %4005 = vmatprep.mubr.msk.bf16.mxu0 %vm351_vm0, %v4434_v54  ;;  %4012 = vmatprep.mubr.msk.bf16.mxu1 %vm351_vm0, %v4434_v54  ;;  %v4532_v54 = vld [vmem:[%s6307_s3 + $0x104] ss:$16 sps:$4 sm:$0xff]  }
  0x40   :  { %2990 = vmatpush1.bf16.msra.mxu0 %v4464_v11  ;;  %3043 = vmatpush1.bf16.msra.mxu1 %v4473_v17 }
  0x41   :  { %2991 = vmatprep.subr.bf16.mxu0 %v4472_v14  ;;  %3044 = vmatprep.subr.bf16.mxu1 %v4481_v20 }
  0x44   :  { %2992 = vmatpush1.bf16.msra.mxu0 %v4470_v15  ;;  %3045 = vmatpush1.bf16.msra.mxu1 %v4479_v21  ;;  %v648_v15 = vunpack.c.0.s8 %v647_v7 }
  0x45   :  { %2993 = vmatprep.subr.bf16.mxu0 %v4478_v18  ;;  %3046 = vmatprep.subr.bf16.mxu1 %v4487_v24 }
  0x46   :  { %446 = vmatmul.mubr.bf16.gmra.mxu0 %v4436_v55  ;;  %539 = vmatmul.mubr.bf16.gmra.mxu1 %v4436_v55  ;;  %v4530_v55 = vld [vmem:[%s6307_s3 + $0x100] ss:$16 sps:$4 sm:$0xff]  }
  0x47   :  { %4006 = vmatprep.mubr.msk.bf16.mxu0 %vm351_vm0, %v4437_v56  ;;  %4013 = vmatprep.mubr.msk.bf16.mxu1 %vm351_vm0, %v4437_v56  ;;  %v4535_v56 = vld [vmem:[%s6307_s3 + $0x324] ss:$16 sps:$4 sm:$0xff]  }
  0x48   :  { %2994 = vmatpush1.bf16.msra.mxu0 %v4476_v19  ;;  %3047 = vmatpush1.bf16.msra.mxu1 %v4485_v25 }
  0x49   :  { %2995 = vmatprep.subr.bf16.mxu0 %v4484_v22  ;;  %3048 = vmatprep.subr.bf16.mxu1 %v4493_v28 }
  0x4c   :  { %2996 = vmatpush1.bf16.msra.mxu0 %v4482_v23  ;;  %3049 = vmatpush1.bf16.msra.mxu1 %v4491_v29 }
  0x4d   :  { %2997 = vmatprep.subr.bf16.mxu0 %v4490_v26  ;;  %3050 = vmatprep.subr.bf16.mxu1 %v4499_v32  ;;  %v5207_v26 = vsub.s32 %v648_v15, %v5202_v16 }
  0x4e   :  { %456 = vmatmul.mubr.bf16.gmra.mxu0 %v4439_v57  ;;  %549 = vmatmul.mubr.bf16.gmra.mxu1 %v4439_v57  ;;  %v4533_v57 = vld [vmem:[%s6307_s3 + $0x320] ss:$16 sps:$4 sm:$0xff]  }
  0x4f   :  { %4007 = vmatprep.mubr.msk.bf16.mxu0 %vm351_vm0, %v4440_v58  ;;  %4014 = vmatprep.mubr.msk.bf16.mxu1 %vm351_vm0, %v4440_v58  ;;  %v4538_v58 = vld [vmem:[%s6307_s3 + $0x4e4] ss:$16 sps:$4 sm:$0xff]   ;;  %vm5232_vm0 = vmor %vm954_vm15, %vm955_vm14 }
  0x50   :  { %2998 = vmatpush2.bf16.msra.mxu0 %v4488_v27  ;;  %3051 = vmatpush2.bf16.msra.mxu1 %v4497_v33 }
  0x51   :  { %2999 = vmatprep.subr.bf16.mxu0 %v4496_v30  ;;  %3052 = vmatprep.subr.bf16.mxu1 %v4505_v36 }
  0x54   :  { %3000 = vmatpush2.bf16.msra.mxu0 %v4494_v31  ;;  %3053 = vmatpush2.bf16.msra.mxu1 %v4503_v37 }
  0x55   :  { %3001 = vmatprep.subr.bf16.mxu0 %v4502_v34  ;;  %3054 = vmatprep.subr.bf16.mxu1 %v4511_v40 }
  0x56   :  { %466 = vmatmul.mubr.bf16.gmra.mxu0 %v4442_v59  ;;  %559 = vmatmul.mubr.bf16.gmra.mxu1 %v4442_v59  ;;  %v4539_v59 = vld [vmem:[%s6307_s3 + $0x300] ss:$16 sps:$4 sm:$0xff]  }
  0x58   :  { %3002 = vmatpush2.bf16.msra.mxu0 %v4500_v35  ;;  %3055 = vmatpush2.bf16.msra.mxu1 %v4509_v41 }
  0x59   :  { %3003 = vmatprep.subr.bf16.mxu0 %v4508_v38  ;;  %3056 = vmatprep.subr.bf16.mxu1 %v4517_v44 }
  0x5c   :  { %3004 = vmatpush2.bf16.msra.mxu0 %v4506_v39  ;;  %3057 = vmatpush2.bf16.msra.mxu1 %v4515_v45 }
  0x5d   :  { %3005 = vmatprep.subr.bf16.mxu0 %v4514_v42  ;;  %3058 = vmatprep.subr.bf16.mxu1 %v4523_v48 }
  0x60   :  { %3006 = vmatpush2.bf16.msra.mxu0 %v4512_v43  ;;  %3059 = vmatpush2.bf16.msra.mxu1 %v4521_v49 }
  0x61   :  { %3007 = vmatprep.subr.bf16.mxu0 %v4520_v46  ;;  %3060 = vmatprep.subr.bf16.mxu1 %v4529_v52 }
  0x64   :  { %3008 = vmatpush2.bf16.msra.mxu0 %v4518_v47  ;;  %3061 = vmatpush2.bf16.msra.mxu1 %v4527_v53 }
  0x65   :  { %3009 = vmatprep.subr.bf16.mxu0 %v4526_v50  ;;  %3062 = vmatprep.subr.bf16.mxu1 %v4535_v56 }
  0x68   :  { %3010 = vmatpush2.bf16.msra.mxu0 %v4524_v51  ;;  %3063 = vmatpush2.bf16.msra.mxu1 %v4533_v57 }
  0x69   :  { %3011 = vmatprep.subr.bf16.mxu0 %v4532_v54  ;;  %3064 = vmatprep.subr.bf16.mxu1 %v4541_v60 }
  0x6c   :  { %3012 = vmatpush2.bf16.msra.mxu0 %v4530_v55  ;;  %3065 = vmatpush2.bf16.msra.mxu1 %v4539_v59 }
  0x6d   :  { %3087 = vmatprep.subr.bf16.mxu0 %v4538_v58  ;;  %3140 = vmatprep.subr.bf16.mxu1 %v4547_v61  ;;  %v4581_v61 = vld [vmem:[%s6307_s3 + $0x28] ss:$16 sps:$4 sm:$0xff]  }
  0xee   :  { %v417_v62 = vpop.f32.mrf.mxu0  ;;  %v510_v63 = vpop.f32.mrf.mxu1 }
  0xef   :  { %v569_v2 = vmax.f32 %v417_v62, %v510_v63 }
  0xf0   :  { %v419_v0 = vpop.f32.mrf.mxu0  ;;  %v512_v1 = vpop.f32.mrf.mxu1 }
  0xf1   :  { %v570_v3 = vmax.f32 %v419_v0, %v512_v1 }
  0xf2   :  { %v421_v4 = vpop.f32.mrf.mxu0  ;;  %v514_v5 = vpop.f32.mrf.mxu1 }
  0xf3   :  { %v593_v9 = vmax.f32 %v569_v2, %v570_v3  ;;  %v571_v13 = vmax.f32 %v421_v4, %v514_v5 }
  0xf4   :  { %v423_v11 = vpop.f32.mrf.mxu0  ;;  %v516_v12 = vpop.f32.mrf.mxu1 }
  0xf5   :  { %v572_v14 = vmax.f32 %v423_v11, %v516_v12  ;;  %v612_v19 = vadd.f32 %v5200_v10, %v593_v9 }
  0xf6   :  { %v427_v17 = vpop.f32.mrf.mxu0  ;;  %v520_v18 = vpop.f32.mrf.mxu1 }
  0xf7   :  { %v594_v20 = vmax.f32 %v571_v13, %v572_v14  ;;  %v573_v24 = vmax.f32 %v427_v17, %v520_v18  ;;  %v624_v29 = vmax.f32 %v612_v19, 0.0 }
  0xf8   :  { %v429_v21 = vpop.f32.mrf.mxu0  ;;  %v522_v22 = vpop.f32.mrf.mxu1 }
  0xf9   :  { %v613_v23 = vadd.f32 %v5200_v10, %v594_v20  ;;  %v574_v25 = vmax.f32 %v429_v21, %v522_v22 }
  0xfa   :  { %v431_v27 = vpop.f32.mrf.mxu0  ;;  %v524_v28 = vpop.f32.mrf.mxu1 }
  0xfb   :  { %v625_v30 = vmax.f32 %v613_v23, 0.0  ;;  %v595_v31 = vmax.f32 %v573_v24, %v574_v25  ;;  %v575_v36 = vmax.f32 %v431_v27, %v524_v28 }
  0xfc   :  { %v433_v32 = vpop.f32.mrf.mxu0  ;;  %v526_v33 = vpop.f32.mrf.mxu1 }
  0xfd   :  { %v636_v34 = vpack.c.bf16 %v625_v30, %v624_v29  ;;  %v4016_v35 = vpack.c.bf16 %v625_v30, %v625_v30  ;;  %v576_v37 = vmax.f32 %v433_v32, %v526_v33  ;;  %v614_v39 = vadd.f32 %v5200_v10, %v595_v31 }
  0xfe   :  { %v437_v40 = vpop.f32.mrf.mxu0  ;;  %v530_v41 = vpop.f32.mrf.mxu1 }
  0xff   :  { %v652_v42 = vrot.slane %v636_v34, %v5207_v26  ;;  %v659_v43 = vrot.slane %v4016_v35, %v5207_v26  ;;  %v596_v44 = vmax.f32 %v575_v36, %v576_v37  ;;  %v626_v51 = vmax.f32 %v614_v39, 0.0 }
 0x100   :  { %v439_v45 = vpop.f32.mrf.mxu0  ;;  %v532_v46 = vpop.f32.mrf.mxu1  ;;  %v577_v53 = vmax.f32 %v437_v40, %v530_v41 }
 0x101   :  { %v660_v47 = vcombine.high %v652_v42, %v652_v42  ;;  %v661_v48 = vcombine.high %v659_v43, %v659_v43  ;;  %v668_v49 = vrot.slane %v652_v42, %v5207_v26  ;;  %v5218_v50 = vrot.slane %v659_v43, %v5207_v26 }
 0x102   :  { %v615_v52 = vadd.f32 %v5200_v10, %v596_v44  ;;  %v578_v54 = vmax.f32 %v439_v45, %v532_v46  ;;  %v441_v55 = vpop.f32.mrf.mxu0  ;;  %v534_v56 = vpop.f32.mrf.mxu1 }
 0x103   :  { %v5224_v57 = vrot.slane %v660_v47, %v5207_v26  ;;  %v5227_v58 = vrot.slane %v661_v48, %v5207_v26  ;;  %v5229_v59 = vcombine.high %v668_v49, %v668_v49  ;;  %v958_v60 = vshrl.u32 %v668_v49, 16 }
 0x104   :  { %v627_v62 = vmax.f32 %v615_v52, 0.0  ;;  %v597_v63 = vmax.f32 %v577_v53, %v578_v54  ;;  %v579_v0 = vmax.f32 %v441_v55, %v534_v56  ;;  %v443_v1 = vpop.f32.mrf.mxu0  ;;  %v536_v2 = vpop.f32.mrf.mxu1  ;;  %v691_v3 = vcombine.high %v5218_v50, %v5218_v50  ;;  %v4544_v54 = vld [vmem:[%s6307_s3 + $0x4c4] ss:$16 sps:$4 sm:$0xff]  }
 0x105   :  { %v5240_v4 = vcombine.high %v5227_v58, %v5227_v58  ;;  %v963_v5 = vshll.u32 %v5224_v57, 16  ;;  %v971_v6 = vshll.u32 %v5229_v59, 16  ;;  %v988_v7 = vshll.u32 %v5227_v58, 16 }
 0x106   :  { %v1229_v8 = vcombine.low %v668_v49, %v5224_v57  ;;  %v637_v11 = vpack.c.bf16 %v627_v62, %v626_v51  ;;  %v4017_v12 = vpack.c.bf16 %v627_v62, %v627_v62  ;;  %v447_v13 = vpop.f32.mrf.mxu0  ;;  %v540_v14 = vpop.f32.mrf.mxu1  ;;  %v616_v17 = vadd.f32 %v5200_v10, %v597_v63 }
 0x107   :  { %v5250_v15 = vsel %vm5232_vm0, %v958_v60, %v963_v5  ;;  %v580_v18 = vmax.f32 %v443_v1, %v536_v2  ;;  %v581_v19 = vmax.f32 %v447_v13, %v540_v14  ;;  %v5260_v25 = vcombine.high %v5224_v57, %v5224_v57 }
 0x108   :  { %v5254_v20 = vrot.slane %v1229_v8, %v5207_v26  ;;  %v701_v21 = vrot.slane %v637_v11, %v5207_v26  ;;  %v708_v22 = vrot.slane %v4017_v12, %v5207_v26  ;;  %v449_v23 = vpop.f32.mrf.mxu0  ;;  %v542_v24 = vpop.f32.mrf.mxu1  ;;  %v628_v27 = vmax.f32 %v616_v17, 0.0 }
 0x109   :  { %v598_v28 = vmax.f32 %v579_v0, %v580_v18  ;;  %v582_v29 = vmax.f32 %v449_v23, %v542_v24  ;;  %v4054_v30 = vcombine.high %v5218_v50, %v5227_v58  ;;  %v975_v40 = vshrl.u32 %v5260_v25, 16 }
 0x10a   :  { %v709_v31 = vcombine.high %v701_v21, %v701_v21  ;;  %v710_v32 = vcombine.high %v708_v22, %v708_v22  ;;  %v5265_v33 = vrot.slane %v701_v21, %v5207_v26  ;;  %v5268_v34 = vrot.slane %v708_v22, %v5207_v26  ;;  %v451_v35 = vpop.f32.mrf.mxu0  ;;  %v544_v36 = vpop.f32.mrf.mxu1 }
 0x10b   :  { %v617_v37 = vadd.f32 %v5200_v10, %v598_v28  ;;  %v599_v38 = vmax.f32 %v581_v19, %v582_v29  ;;  %v583_v39 = vmax.f32 %v451_v35, %v544_v36  ;;  %v1230_v13 = vcombine.low %v5260_v25, %v5218_v50 }
 0x10c   :  { %v5273_v41 = vrot.slane %v709_v31, %v5207_v26  ;;  %v5276_v42 = vrot.slane %v710_v32, %v5207_v26  ;;  %v5280_v43 = vcombine.high %v5265_v33, %v5265_v33  ;;  %v5284_v44 = vcombine.high %v5268_v34, %v5268_v34  ;;  %v453_v45 = vpop.f32.mrf.mxu0  ;;  %v546_v46 = vpop.f32.mrf.mxu1 }
 0x10d   :  { %v629_v51 = vmax.f32 %v617_v37, 0.0  ;;  %v618_v1 = vadd.f32 %v5200_v10, %v599_v38  ;;  %v584_v5 = vmax.f32 %v453_v45, %v546_v46  ;;  %v1253_v28 = vrot.slane %v4054_v30, %v5207_v26 }
 0x10e   :  { %v741_v52 = vcombine.high %v5273_v41, %v5273_v41  ;;  %v457_v56 = vpop.f32.mrf.mxu0  ;;  %v550_v60 = vpop.f32.mrf.mxu1  ;;  %v1232_v24 = vcombine.low %v5273_v41, %v5280_v43 }
 0x10f   :  { %v638_v63 = vpack.c.bf16 %v629_v51, %v628_v27  ;;  %v4018_v0 = vpack.c.bf16 %v629_v51, %v629_v51  ;;  %v585_v8 = vmax.f32 %v457_v56, %v550_v60  ;;  %v630_v18 = vmax.f32 %v618_v1, 0.0 }
 0x110   :  { %v5298_v2 = vshll.u32 %v741_v52, 16  ;;  %v459_v11 = vpop.f32.mrf.mxu0  ;;  %v552_v12 = vpop.f32.mrf.mxu1  ;;  %v600_v21 = vmax.f32 %v583_v39, %v584_v5  ;;  %v1246_v27 = vrot.slane %v1230_v13, %v5207_v26  ;;  %v1260_v46 = vrot.slane %v1232_v24, %v5207_v26 }
 0x111   :  { %v750_v14 = vrot.slane %v638_v63, %v5207_v26  ;;  %v757_v17 = vrot.slane %v4018_v0, %v5207_v26  ;;  %v586_v19 = vmax.f32 %v459_v11, %v552_v12 }
 0x112   :  { %v461_v22 = vpop.f32.mrf.mxu0  ;;  %v554_v23 = vpop.f32.mrf.mxu1  ;;  %v619_v36 = vadd.f32 %v5200_v10, %v600_v21  ;;  %v1261_v56 = vcombine.low %v5254_v20, %v1246_v27  ;;  %v1262_v5 = vcombine.low %v1253_v28, %v1260_v46 }
 0x113   :  { %v758_v29 = vcombine.high %v750_v14, %v750_v14  ;;  %v759_v31 = vcombine.high %v757_v17, %v757_v17  ;;  %v5309_v32 = vrot.slane %v750_v14, %v5207_v26  ;;  %v5312_v35 = vrot.slane %v757_v17, %v5207_v26 }
 0x114   :  { %v601_v37 = vmax.f32 %v585_v8, %v586_v19  ;;  %v587_v38 = vmax.f32 %v461_v22, %v554_v23  ;;  %v463_v39 = vpop.f32.mrf.mxu0  ;;  %v556_v45 = vpop.f32.mrf.mxu1  ;;  %v631_v60 = vmax.f32 %v619_v36, 0.0  ;;  %v966_v8 = vshrl.u32 %v5224_v57, 16 }
 0x115   :  { %v5317_v51 = vrot.slane %v758_v29, %v5207_v26  ;;  %v5320_v30 = vrot.slane %v759_v31, %v5207_v26  ;;  %v588_v52 = vmax.f32 %v463_v39, %v556_v45  ;;  %v1269_v14 = vrot.slane %v1261_v56, %v5207_v26 }
 0x116   :  { %v620_v63 = vadd.f32 %v5200_v10, %v601_v37  ;;  %v467_v0 = vpop.f32.mrf.mxu0  ;;  %v560_v1 = vpop.f32.mrf.mxu1  ;;  %v639_v17 = vpack.c.bf16 %v631_v60, %v630_v18  ;;  %v4019_v19 = vpack.c.bf16 %v631_v60, %v631_v60  ;;  %v1276_v23 = vrot.slane %v1262_v5, %v5207_v26 }
 0x117   :  { %v5327_v11 = vcombine.high %v5317_v51, %v5317_v51  ;;  %v602_v12 = vmax.f32 %v587_v38, %v588_v52  ;;  %v589_v13 = vmax.f32 %v467_v0, %v560_v1  ;;  %v5336_v28 = vsel %vm5232_vm0, %v966_v8, %v971_v6 }
 0x118   :  { %v632_v21 = vmax.f32 %v620_v63, 0.0  ;;  %v469_v20 = vpop.f32.mrf.mxu0  ;;  %v562_v22 = vpop.f32.mrf.mxu1  ;;  %v980_v29 = vshll.u32 %v5218_v50, 16  ;;  %v802_v31 = vrot.slane %v639_v17, %v5207_v26  ;;  %v809_v18 = vrot.slane %v4019_v19, %v5207_v26 }
 0x119   :  { %v621_v24 = vadd.f32 %v5200_v10, %v602_v12  ;;  %v590_v27 = vmax.f32 %v469_v20, %v562_v22  ;;  %v5341_v38 = vcombine.low %v1269_v14, %v1276_v23  ;;  %v983_v39 = vshrl.u32 %v5218_v50, 16 }
 0x11a   :  { %v471_v36 = vpop.f32.mrf.mxu0  ;;  %v564_v37 = vpop.f32.mrf.mxu1  ;;  %v5348_v6 = vsel %vm5232_vm0, %v975_v40, %v980_v29  ;;  %v810_v56 = vcombine.high %v802_v31, %v802_v31  ;;  %v811_v60 = vcombine.high %v809_v18, %v809_v18  ;;  %v818_v63 = vrot.slane %v802_v31, %v5207_v26 }
 0x11b   :  { %v633_v45 = vmax.f32 %v621_v24, 0.0  ;;  %v603_v46 = vmax.f32 %v589_v13, %v590_v27  ;;  %v591_v52 = vmax.f32 %v471_v36, %v564_v37  ;;  %v5352_v0 = vrot.slane %v809_v18, %v5207_v26 }
 0x11c   :  { %v473_v1 = vpop.f32.mrf.mxu0  ;;  %v566_v5 = vpop.f32.mrf.mxu1  ;;  %v5356_v25 = vrot.slane %v810_v56, %v5207_v26  ;;  %v5359_v40 = vrot.slane %v811_v60, %v5207_v26  ;;  %v5361_v17 = vcombine.high %v818_v63, %v818_v63  ;;  %v1094_v19 = vshrl.u32 %v818_v63, 16 }
 0x11d   :  { %v640_v8 = vpack.c.bf16 %v633_v45, %v632_v21  ;;  %v4020_v12 = vpack.c.bf16 %v633_v45, %v633_v45  ;;  %v622_v13 = vadd.f32 %v5200_v10, %v603_v46  ;;  %v592_v14 = vmax.f32 %v473_v1, %v566_v5 }
 0x11e   :  { %v5367_v21 = vcombine.high %v5359_v40, %v5359_v40  ;;  %v842_v27 = vcombine.high %v5356_v25, %v5356_v25  ;;  %v1329_v29 = vcombine.low %v818_v63, %v5356_v25  ;;  %v4056_v31 = vcombine.high %v5352_v0, %v5359_v40 }
 0x11f   :  { %v851_v20 = vrot.slane %v640_v8, %v5207_v26  ;;  %v858_v22 = vrot.slane %v4020_v12, %v5207_v26  ;;  %v634_v23 = vmax.f32 %v622_v13, 0.0  ;;  %v604_v24 = vmax.f32 %v591_v52, %v592_v14 }
 0x120   :  { %v1111_v52 = vshrl.u32 %v842_v27, 16  ;;  %v1330_v56 = vcombine.low %v842_v27, %v5352_v0  ;;  %v1339_v60 = vrot.slane %v1329_v29, %v5207_v26  ;;  %v1353_v14 = vrot.slane %v4056_v31, %v5207_v26 }
 0x121   :  { %v859_v18 = vcombine.high %v851_v20, %v851_v20  ;;  %v860_v36 = vcombine.high %v858_v22, %v858_v22  ;;  %v5375_v37 = vrot.slane %v851_v20, %v5207_v26  ;;  %v5378_v45 = vrot.slane %v858_v22, %v5207_v26 }
 0x122   :  { %v623_v46 = vadd.f32 %v5200_v10, %v604_v24  ;;  %v1346_v13 = vrot.slane %v1330_v56, %v5207_v26  ;;  %v841_v20 = vcombine.high %v5352_v0, %v5352_v0  ;;  %v1099_v24 = vshll.u32 %v5356_v25, 16 }
 0x123   :  { %v5384_v63 = vrot.slane %v859_v18, %v5207_v26  ;;  %v5387_v1 = vrot.slane %v860_v36, %v5207_v26  ;;  %v5391_v5 = vcombine.high %v5378_v45, %v5378_v45  ;;  %v889_v10 = vcombine.high %v5375_v37, %v5375_v37 }
 0x124   :  { %v635_v12 = vmax.f32 %v623_v46, 0.0  ;;  %v1102_v27 = vshrl.u32 %v5356_v25, 16  ;;  %v1361_v46 = vcombine.low %v1339_v60, %v1346_v13  ;;  %v1101_v56 = vsel %vm5232_vm0, %v1094_v19, %v1099_v24 }
 0x125   :  { %v891_v22 = vcombine.high %v5384_v63, %v5384_v63  ;;  %v1332_v36 = vcombine.low %v5384_v63, %v889_v10  ;;  %v1107_v31 = vshll.u32 %v5361_v17, 16  ;;  %v1116_v62 = vshll.u32 %v5352_v0, 16 }
 0x126   :  { %v641_v29 = vpack.c.bf16 %v635_v12, %v634_v23  ;;  %v4021_v18 = vpack.c.bf16 %v635_v12, %v635_v12  ;;  %v1119_v49 = vshrl.u32 %v5352_v0, 16  ;;  %v1369_v23 = vrot.slane %v1361_v46, %v5207_v26 }
 0x127   :  { %v1360_v8 = vrot.slane %v1332_v36, %v5207_v26  ;;  %v1109_v60 = vsel %vm5232_vm0, %v1102_v27, %v1107_v31  ;;  %v1118_v19 = vsel %vm5232_vm0, %v1111_v52, %v1116_v62  ;;  %v1124_v12 = vshll.u32 %v5359_v40, 16 }
 0x128   :  { %v900_v9 = vrot.slane %v641_v29, %v5207_v26  ;;  %v907_v48 = vrot.slane %v4021_v18, %v5207_v26  ;;  %v1128_v13 = vshrl.u32 %v841_v20, 16  ;;  %v1133_v27 = vshll.u32 %v5367_v21, 16 }
 0x129   :  { %v1362_v18 = vcombine.low %v1353_v14, %v1360_v8  ;;  %v1126_v36 = vsel %vm5232_vm0, %v1119_v49, %v1124_v12  ;;  %v1136_v46 = vshrl.u32 %v5367_v21, 16  ;;  %v1145_v20 = vshrl.u32 %v5384_v63, 16 }
 0x12a   :  { %v908_v24 = vcombine.high %v900_v9, %v900_v9  ;;  %v909_v47 = vcombine.high %v907_v48, %v907_v48  ;;  %v5420_v55 = vrot.slane %v900_v9, %v5207_v26  ;;  %v5423_v29 = vrot.slane %v907_v48, %v5207_v26 }
 0x12b   :  { %v1141_v9 = vshll.u32 %v5375_v37, 16  ;;  %v1376_v48 = vrot.slane %v1362_v18, %v5207_v26  ;;  %v1135_v8 = vsel %vm5232_vm0, %v1128_v13, %v1133_v27  ;;  %v1150_v49 = vshll.u32 %v889_v10, 16  ;;  %v4536_v18 = vld [vmem:[%s6307_s3 + $0x4e0] ss:$16 sps:$4 sm:$0xff]  }
 0x12c   :  { %v5430_v62 = vrot.slane %v908_v24, %v5207_v26  ;;  %v5433_v52 = vrot.slane %v909_v47, %v5207_v26  ;;  %v1153_v14 = vshrl.u32 %v889_v10, 16  ;;  %v1158_v47 = vshll.u32 %v891_v22, 16 }
 0x12d   :  { %v1143_v12 = vsel %vm5232_vm0, %v1136_v46, %v1141_v9  ;;  %v1529_v24 = vcombine.low %v1101_v56, %v1109_v60  ;;  %v5446_v53 = vcombine.low %v1369_v23, %v1376_v48  ;;  %v1152_v13 = vsel %vm5232_vm0, %v1145_v20, %v1150_v49 }
 0x12e   :  { %v5442_v31 = vcombine.high %v5430_v62, %v5430_v62  ;;  %v1530_v27 = vcombine.low %v1118_v19, %v1126_v36  ;;  %v1531_v10 = vcombine.low %v1135_v8, %v1143_v12  ;;  %v1160_v46 = vsel %vm5232_vm0, %v1153_v14, %v1158_v47  ;;  %v4542_v14 = vld [vmem:[%s6307_s3 + $0x4c0] ss:$16 sps:$4 sm:$0xff]  }
 0x12f   :  { %v1539_v22 = vrot.slane %v1529_v24, %v5207_v26  ;;  %v990_v56 = vsel %vm5232_vm0, %v983_v39, %v988_v7  ;;  %v992_v23 = vshrl.u32 %v691_v3, 16  ;;  %3013 = vmatprep.mubr.bf16.mxu0 %v5446_v53  ;;  %v1532_v60 = vcombine.low %v1152_v13, %v1160_v46 }
 0x130   :  { %v1546_v19 = vrot.slane %v1530_v27, %v5207_v26  ;;  %v1553_v36 = vrot.slane %v1531_v10, %v5207_v26  ;;  %v997_v9 = vshll.u32 %v5240_v4, 16  ;;  %3014 = vmatmul.mubr.bf16.vlgmr.msra.gmra.mxu0 %v5341_v38  ;;  %v1000_v20 = vshrl.u32 %v5240_v4, 16  ;;  %v4550_v27 = vld [vmem:[%s6307_s3 + $0x4a4] ss:$16 sps:$4 sm:$0xff]  }
 0x131   :  { %v6319_v48 = vshll.u32 %v5280_v43, 16  ;;  %v6320_v7 = vshrl.u32 %v5273_v41, 16  ;;  %v6321_v39 = vshrl.u32 %v5280_v43, 16  ;;  %v1429_v49 = vcombine.low %v5250_v15, %v5336_v28  ;;  %3088 = vmatpush1.bf16.msra.mxu0 %v4536_v18 }
 0x132   :  { %v1560_v12 = vrot.slane %v1532_v60, %v5207_v26  ;;  %v1561_v47 = vcombine.low %v1539_v22, %v1546_v19  ;;  %v999_v24 = vsel %vm5232_vm0, %v992_v23, %v997_v9  ;;  %v1430_v13 = vcombine.low %v5348_v6, %v990_v56  ;;  %3089 = vmatprep.subr.bf16.mxu0 %v4544_v54 }
 0x133   :  { %v1016_v3 = vsel %vm5232_vm0, %v6320_v7, %v6319_v48  ;;  %v1024_v8 = vsel %vm5232_vm0, %v6321_v39, %v5298_v2  ;;  %v6322_v43 = vshll.u32 %v5265_v33, 16  ;;  %v1439_v28 = vrot.slane %v1429_v49, %v5207_v26  ;;  %v4548_v39 = vld [vmem:[%s6307_s3 + $0x4a0] ss:$16 sps:$4 sm:$0xff]  }
 0x134   :  { %v1432_v15 = vcombine.low %v1016_v3, %v1024_v8  ;;  %v5501_v18 = vcombine.high %v5387_v1, %v5387_v1  ;;  %v1562_v10 = vcombine.low %v1553_v36, %v1560_v12  ;;  %v1569_v6 = vrot.slane %v1561_v47, %v5207_v26 }
 0x135   :  { %v1007_v2 = vsel %vm5232_vm0, %v1000_v20, %v6322_v43  ;;  %v1446_v46 = vrot.slane %v1430_v13, %v5207_v26  ;;  %v5511_v56 = vcombine.high %v5423_v29, %v5423_v29  ;;  %v1378_v60 = vcombine.low %v5378_v45, %v5387_v1  ;;  %3090 = vmatpush1.bf16.msra.mxu0 %v4542_v14 }
 0x136   :  { %v1431_v54 = vcombine.low %v999_v24, %v1007_v2  ;;  %v1460_v22 = vrot.slane %v1432_v15, %v5207_v26  ;;  %v1179_v23 = vshrl.u32 %v5501_v18, 16  ;;  %v1576_v19 = vrot.slane %v1562_v10, %v5207_v26  ;;  %3091 = vmatprep.subr.bf16.mxu0 %v4550_v27  ;;  %v4556_v24 = vld [vmem:[%s6307_s3 + $0x484] ss:$16 sps:$4 sm:$0xff]  }
 0x137   :  { %v1461_v9 = vcombine.low %v1439_v28, %v1446_v46  ;;  %v1379_v20 = vcombine.low %v5501_v18, %v5420_v55  ;;  %v4057_v48 = vcombine.high %v5420_v55, %v5430_v62  ;;  %v1381_v7 = vcombine.low %v5433_v52, %v5511_v56  ;;  %v4565_v18 = vld [vmem:[%s6307_s3 + $0x8c] ss:$16 sps:$4 sm:$0xff]  }
 0x138   :  { %v1453_v36 = vrot.slane %v1431_v54, %v5207_v26  ;;  %v1388_v3 = vrot.slane %v1378_v60, %v5207_v26  ;;  %v5530_v8 = vcombine.high %v5276_v42, %v5276_v42  ;;  %v5532_v49 = vcombine.low %v1569_v6, %v1576_v19  ;;  %v4545_v54 = vld [vmem:[%s6307_s3 + $0xe8] ss:$16 sps:$4 sm:$0xff]  }
 0x139   :  { %v1469_v12 = vrot.slane %v1461_v9, %v5207_v26  ;;  %v1395_v47 = vrot.slane %v1379_v20, %v5207_v26  ;;  %v1402_v13 = vrot.slane %v4057_v48, %v5207_v26  ;;  %v1409_v43 = vrot.slane %v1381_v7, %v5207_v26  ;;  %3092 = vmatpush1.bf16.msra.mxu0 %v4548_v39  ;;  %v4553_v7 = vld [vmem:[%s6307_s3 + $0xcc] ss:$16 sps:$4 sm:$0xff]  }
 0x13a   :  { %v1462_v14 = vcombine.low %v1453_v36, %v1460_v22  ;;  %v5543_v2 = vcombine.high %v5312_v35, %v5312_v35  ;;  %v1043_v15 = vshrl.u32 %v5530_v8, 16  ;;  %3066 = vmatprep.mubr.bf16.mxu1 %v5532_v49  ;;  %v1278_v10 = vcombine.low %v5268_v34, %v5276_v42  ;;  %3093 = vmatprep.subr.bf16.mxu0 %v4556_v24 }
 0x13b   :  { %v1410_v27 = vcombine.low %v1388_v3, %v1395_v47  ;;  %v1279_v6 = vcombine.low %v5530_v8, %v5309_v32  ;;  %v1411_v46 = vcombine.low %v1402_v13, %v1409_v43  ;;  %v4055_v22 = vcombine.high %v5309_v32, %v5317_v51  ;;  %v4562_v43 = vld [vmem:[%s6307_s3 + $0x464] ss:$16 sps:$4 sm:$0xff]   ;;  %v4575_v8 = vld [vmem:[%s6307_s3 + $0x48] ss:$16 sps:$4 sm:$0xff]  }
 0x13c   :  { %v1476_v28 = vrot.slane %v1462_v14, %v5207_v26  ;;  %v1281_v60 = vcombine.low %v5320_v30, %v5543_v2  ;;  %v1729_v19 = vcombine.low %v5356_v25, %v5361_v17  ;;  %v1288_v20 = vrot.slane %v1278_v10, %v5207_v26  ;;  %v4554_v17 = vld [vmem:[%s6307_s3 + $0x480] ss:$16 sps:$4 sm:$0xff]  }
 0x13d   :  { %v1418_v9 = vrot.slane %v1410_v27, %v5207_v26  ;;  %v1295_v48 = vrot.slane %v1279_v6, %v5207_v26  ;;  %v1425_v3 = vrot.slane %v1411_v46, %v5207_v26  ;;  %v1302_v39 = vrot.slane %v4055_v22, %v5207_v26  ;;  %3094 = vmatpush1.bf16.msra.mxu0 %v4554_v17 }
 0x13e   :  { %v5561_v36 = vcombine.low %v1469_v12, %v1476_v28  ;;  %v1309_v14 = vrot.slane %v1281_v60, %v5207_v26  ;;  %v1730_v25 = vcombine.low %v5352_v0, %v5359_v40  ;;  %v1731_v47 = vcombine.low %v5367_v21, %v5375_v37  ;;  %v4551_v28 = vld [vmem:[%s6307_s3 + $0xc8] ss:$16 sps:$4 sm:$0xff]   ;;  %3095 = vmatprep.subr.bf16.mxu0 %v4562_v43 }
 0x13f   :  { %v1310_v12 = vcombine.low %v1288_v20, %v1295_v48  ;;  %v4060_v24 = vcombine.high %v5375_v37, %v5384_v63  ;;  %v1739_v13 = vrot.slane %v1729_v19, %v5207_v26  ;;  %v5586_v0 = vcombine.low %v1418_v9, %v1425_v3  ;;  %v4560_v3 = vld [vmem:[%s6307_s3 + $0x460] ss:$16 sps:$4 sm:$0xff]  }
 0x140   :  { %3067 = vmatmul.mubr.bf16.vlgmr.msra.gmra.mxu1 %v5561_v36  ;;  %v1311_v40 = vcombine.low %v1302_v39, %v1309_v14  ;;  %v1746_v27 = vrot.slane %v1730_v25, %v5207_v26  ;;  %v938_v21 = vcombine.high %v5420_v55, %v5420_v55  ;;  %v1753_v63 = vrot.slane %v1731_v47, %v5207_v26  ;;  %v4557_v47 = vld [vmem:[%s6307_s3 + $0xa8] ss:$16 sps:$4 sm:$0xff]  }
 0x141   :  { %3141 = vmatpush1.bf16.msra.mxu1 %v4545_v54  ;;  %v1318_v37 = vrot.slane %v1310_v12, %v5207_v26  ;;  %v1760_v10 = vrot.slane %v4060_v24, %v5207_v26  ;;  %v941_v6 = vcombine.high %v5433_v52, %v5433_v52  ;;  %v4559_v54 = vld [vmem:[%s6307_s3 + $0xac] ss:$16 sps:$4 sm:$0xff]   ;;  %3023 = vmatprep.mubr.bf16.mxu0 %v5586_v0  ;;  %v1167_v60 = vshll.u32 %v5387_v1, 16  ;;  %v4568_v24 = vld [vmem:[%s6307_s3 + $0x444] ss:$16 sps:$4 sm:$0xff]  }
 0x142   :  { %3142 = vmatprep.subr.bf16.mxu1 %v4553_v7  ;;  %v1325_v46 = vrot.slane %v1311_v40, %v5207_v26  ;;  %v1761_v22 = vcombine.low %v1739_v13, %v1746_v27  ;;  %v1170_v19 = vshrl.u32 %v5387_v1, 16  ;;  %v1175_v20 = vshll.u32 %v5391_v5, 16  ;;  %3096 = vmatpush1.bf16.msra.mxu0 %v4560_v3 }
 0x143   :  { %v1762_v9 = vcombine.low %v1753_v63, %v1760_v10  ;;  %v1184_v48 = vshll.u32 %v5420_v55, 16  ;;  %v1187_v7 = vshrl.u32 %v5420_v55, 16  ;;  %v6323_v25 = vshrl.u32 %v5378_v45, 16  ;;  %3097 = vmatprep.subr.bf16.mxu0 %v4568_v24 }
 0x144   :  { %v5612_v39 = vcombine.low %v1318_v37, %v1325_v46  ;;  %v1769_v14 = vrot.slane %v1761_v22, %v5207_v26  ;;  %v1192_v12 = vshll.u32 %v5430_v62, 16  ;;  %v1177_v43 = vsel %vm5232_vm0, %v1170_v19, %v1175_v20  ;;  %v4566_v46 = vld [vmem:[%s6307_s3 + $0x440] ss:$16 sps:$4 sm:$0xff]   ;;  %v4563_v20 = vld [vmem:[%s6307_s3 + $0x88] ss:$16 sps:$4 sm:$0xff]  }
 0x145   :  { %3143 = vmatpush1.bf16.msra.mxu1 %v4551_v28  ;;  %v1169_v17 = vsel %vm5232_vm0, %v6323_v25, %v1167_v60  ;;  %v1776_v13 = vrot.slane %v1762_v9, %v5207_v26  ;;  %v1186_v45 = vsel %vm5232_vm0, %v1179_v23, %v1184_v48  ;;  %v1196_v40 = vshrl.u32 %v938_v21, 16 }
 0x146   :  { %3144 = vmatprep.subr.bf16.mxu1 %v4559_v54  ;;  %3024 = vmatmul.mubr.bf16.gmra.mxu0 %v5612_v39  ;;  %v1194_v28 = vsel %vm5232_vm0, %v1187_v7, %v1192_v12  ;;  %v1201_v27 = vshll.u32 %v5442_v31, 16  ;;  %v1204_v37 = vshrl.u32 %v5442_v31, 16  ;;  %v1209_v63 = vshll.u32 %v5423_v29, 16 }
 0x147   :  { %v5642_v10 = vcombine.low %v1769_v14, %v1776_v13  ;;  %v1213_v23 = vshrl.u32 %v5433_v52, 16  ;;  %v1218_v21 = vshll.u32 %v5511_v56, 16  ;;  %v1221_v54 = vshrl.u32 %v5511_v56, 16  ;;  %v4574_v56 = vld [vmem:[%s6307_s3 + $0x424] ss:$16 sps:$4 sm:$0xff]   ;;  %3098 = vmatpush1.bf16.msra.mxu0 %v4566_v46 }
 0x148   :  { %v1203_v22 = vsel %vm5232_vm0, %v1196_v40, %v1201_v27  ;;  %v1211_v60 = vsel %vm5232_vm0, %v1204_v37, %v1209_v63  ;;  %v1226_v19 = vshll.u32 %v941_v6, 16  ;;  %v1578_v9 = vcombine.low %v1169_v17, %v1177_v43  ;;  %v4571_v14 = vld [vmem:[%s6307_s3 + $0x6c] ss:$16 sps:$4 sm:$0xff]   ;;  %v4569_v40 = vld [vmem:[%s6307_s3 + $0x68] ss:$16 sps:$4 sm:$0xff]   ;;  %3099 = vmatprep.subr.bf16.mxu0 %v4574_v56 }
 0x149   :  { %3145 = vmatpush1.bf16.msra.mxu1 %v4557_v47  ;;  %3119 = vmatprep.mubr.bf16.mxu0 %v5642_v10  ;;  %v1220_v48 = vsel %vm5232_vm0, %v1213_v23, %v1218_v21  ;;  %v1579_v7 = vcombine.low %v1186_v45, %v1194_v28  ;;  %v1580_v3 = vcombine.low %v1203_v22, %v1211_v60  ;;  %v1031_v47 = vshll.u32 %v5276_v42, 16  ;;  %v4572_v28 = vld [vmem:[%s6307_s3 + $0x420] ss:$16 sps:$4 sm:$0xff]   ;;  %v4580_v21 = vld [vmem:[%s6307_s3 + $0x404] ss:$16 sps:$4 sm:$0xff]  }
 0x14a   :  { %v788_v6 = vcombine.high %v5309_v32, %v5309_v32  ;;  %v1228_v25 = vsel %vm5232_vm0, %v1221_v54, %v1226_v19  ;;  %v1588_v17 = vrot.slane %v1578_v9, %v5207_v26  ;;  %v791_v12 = vcombine.high %v5320_v30, %v5320_v30  ;;  %3146 = vmatprep.subr.bf16.mxu1 %v4565_v18  ;;  %v4577_v60 = vld [vmem:[%s6307_s3 + $0x4c] ss:$16 sps:$4 sm:$0xff]  }
 0x14b   :  { %v1581_v24 = vcombine.low %v1220_v48, %v1228_v25  ;;  %v1595_v13 = vrot.slane %v1579_v7, %v5207_v26  ;;  %v1602_v43 = vrot.slane %v1580_v3, %v5207_v26  ;;  %v1034_v45 = vshrl.u32 %v5276_v42, 16  ;;  %3100 = vmatpush1.bf16.msra.mxu0 %v4572_v28 }
 0x14c   :  { %v6324_v27 = vshrl.u32 %v5268_v34, 16  ;;  %v1039_v63 = vshll.u32 %v5284_v44, 16  ;;  %v1048_v18 = vshll.u32 %v5309_v32, 16  ;;  %v1051_v23 = vshrl.u32 %v5309_v32, 16  ;;  %3101 = vmatprep.subr.bf16.mxu0 %v4580_v21 }
 0x14d   :  { %3147 = vmatpush1.bf16.msra.mxu1 %v4563_v20  ;;  %v1609_v54 = vrot.slane %v1581_v24, %v5207_v26  ;;  %v1610_v46 = vcombine.low %v1588_v17, %v1595_v13  ;;  %v1056_v34 = vshll.u32 %v5317_v51, 16  ;;  %v1060_v22 = vshrl.u32 %v788_v6, 16  ;;  %v4586_v24 = vld [vmem:[%s6307_s3 + $0x5e4] ss:$16 sps:$4 sm:$0xff]  }
 0x14e   :  { %v1033_v37 = vsel %vm5232_vm0, %v6324_v27, %v1031_v47  ;;  %3148 = vmatprep.subr.bf16.mxu1 %v4571_v14  ;;  %v1041_v19 = vsel %vm5232_vm0, %v1034_v45, %v1039_v63  ;;  %v1050_v9 = vsel %vm5232_vm0, %v1043_v15, %v1048_v18  ;;  %v1065_v20 = vshll.u32 %v5327_v11, 16  ;;  %v4578_v15 = vld [vmem:[%s6307_s3 + $0x400] ss:$16 sps:$4 sm:$0xff]   ;;  %v4583_v27 = vld [vmem:[%s6307_s3 + $0x2c] ss:$16 sps:$4 sm:$0xff]  }
 0x14f   :  { %v1068_v56 = vshrl.u32 %v5327_v11, 16  ;;  %v1611_v48 = vcombine.low %v1602_v43, %v1609_v54  ;;  %v1618_v7 = vrot.slane %v1610_v46, %v5207_v26  ;;  %v1058_v3 = vsel %vm5232_vm0, %v1051_v23, %v1056_v34  ;;  %3102 = vmatpush1.bf16.msra.mxu0 %v4578_v15 }
 0x150   :  { %v1073_v6 = vshll.u32 %v5312_v35, 16  ;;  %v1067_v14 = vsel %vm5232_vm0, %v1060_v22, %v1065_v20  ;;  %v1077_v25 = vshrl.u32 %v5320_v30, 16  ;;  %v1082_v17 = vshll.u32 %v5543_v2, 16  ;;  %3103 = vmatprep.subr.bf16.mxu0 %v4586_v24  ;;  %v4592_v22 = vld [vmem:[%s6307_s3 + $0x5c4] ss:$16 sps:$4 sm:$0xff]  }
 0x151   :  { %v1085_v47 = vshrl.u32 %v5543_v2, 16  ;;  %3149 = vmatpush1.bf16.msra.mxu1 %v4569_v40  ;;  %v1625_v13 = vrot.slane %v1611_v48, %v5207_v26  ;;  %v1090_v45 = vshll.u32 %v791_v12, 16  ;;  %v1478_v28 = vcombine.low %v1033_v37, %v1041_v19  ;;  %v4584_v37 = vld [vmem:[%s6307_s3 + $0x5e0] ss:$16 sps:$4 sm:$0xff]  }
 0x152   :  { %v1075_v43 = vsel %vm5232_vm0, %v1068_v56, %v1073_v6  ;;  %3150 = vmatprep.subr.bf16.mxu1 %v4577_v60  ;;  %v1084_v2 = vsel %vm5232_vm0, %v1077_v25, %v1082_v17  ;;  %v1479_v40 = vcombine.low %v1050_v9, %v1058_v3  ;;  %v1630_v18 = vcombine.low %v5218_v50, %v5227_v58 }
 0x153   :  { %v1480_v63 = vcombine.low %v1067_v14, %v1075_v43  ;;  %v5734_v23 = vcombine.low %v1618_v7, %v1625_v13  ;;  %v1092_v21 = vsel %vm5232_vm0, %v1085_v47, %v1090_v45  ;;  %v1488_v12 = vrot.slane %v1478_v28, %v5207_v26  ;;  %3104 = vmatpush2.bf16.msra.mxu0 %v4584_v37  ;;  %v4590_v7 = vld [vmem:[%s6307_s3 + $0x5c0] ss:$16 sps:$4 sm:$0xff]   ;;  %v4593_v43 = vld [vmem:[%s6307_s3 + $0x1e8] ss:$16 sps:$4 sm:$0xff]   ;;  %v4604_v45 = vld [vmem:[%s6307_s3 + $0x584] ss:$16 sps:$4 sm:$0xff]  }
 0x154   :  { %v6325_v54 = vcombine.low %v5224_v57, %v5229_v59  ;;  %v1481_v34 = vcombine.low %v1084_v2, %v1092_v21  ;;  %v1495_v50 = vrot.slane %v1479_v40, %v5207_v26  ;;  %v4589_v57 = vld [vmem:[%s6307_s3 + $0xc] ss:$16 sps:$4 sm:$0xff]   ;;  %v1646_v59 = vrot.slane %v1630_v18, %v5207_v26  ;;  %3105 = vmatprep.subr.bf16.mxu0 %v4592_v22  ;;  %v4596_v47 = vld [vmem:[%s6307_s3 + $0x5a0] ss:$16 sps:$4 sm:$0xff]   ;;  %v4599_v2 = vld [vmem:[%s6307_s3 + $0x1c8] ss:$16 sps:$4 sm:$0xff]  }
 0x155   :  { %v1502_v58 = vrot.slane %v1480_v63, %v5207_v26  ;;  %3151 = vmatpush1.bf16.msra.mxu1 %v4575_v8  ;;  %3076 = vmatprep.mubr.bf16.mxu1 %v5734_v23  ;;  %v6326_v60 = vcombine.low %v5240_v4, %v5265_v33  ;;  %v6327_v9 = vcombine.high %v5265_v33, %v5273_v41  ;;  %v4587_v4 = vld [vmem:[%s6307_s3 + $0x8] ss:$16 sps:$4 sm:$0xff]   ;;  %v4598_v33 = vld [vmem:[%s6307_s3 + $0x5a4] ss:$16 sps:$4 sm:$0xff]   ;;  %v4595_v41 = vld [vmem:[%s6307_s3 + $0x1ec] ss:$16 sps:$4 sm:$0xff]  }
 0x156   :  { %v1639_v46 = vrot.slane %v6325_v54, %v5207_v26  ;;  %3152 = vmatprep.subr.bf16.mxu1 %v4583_v27  ;;  %v1509_v56 = vrot.slane %v1481_v34, %v5207_v26  ;;  %v1510_v48 = vcombine.low %v1488_v12, %v1495_v50  ;;  %v4601_v28 = vld [vmem:[%s6307_s3 + $0x1cc] ss:$16 sps:$4 sm:$0xff]   ;;  %v4602_v27 = vld [vmem:[%s6307_s3 + $0x580] ss:$16 sps:$4 sm:$0xff]   ;;  %v4610_v40 = vld [vmem:[%s6307_s3 + $0x564] ss:$16 sps:$4 sm:$0xff]   ;;  %v1780_v37 = vcombine.low %v5442_v31, %v5423_v29 }
 0x157   :  { %v1653_v19 = vrot.slane %v6326_v60, %v5207_v26  ;;  %v1660_v20 = vrot.slane %v6327_v9, %v5207_v26  ;;  %3106 = vmatpush2.bf16.msra.mxu0 %v4590_v7  ;;  %v4608_v63 = vld [vmem:[%s6307_s3 + $0x560] ss:$16 sps:$4 sm:$0xff]   ;;  %v4605_v18 = vld [vmem:[%s6307_s3 + $0x1a8] ss:$16 sps:$4 sm:$0xff]   ;;  %v4616_v21 = vld [vmem:[%s6307_s3 + $0x544] ss:$16 sps:$4 sm:$0xff]   ;;  %v4061_v54 = vcombine.high %v5423_v29, %v5433_v52  ;;  %v1779_v34 = vcombine.low %v5420_v55, %v5430_v62 }
 0x158   :  { %v1661_v3 = vcombine.low %v1639_v46, %v1646_v59  ;;  %v1511_v8 = vcombine.low %v1502_v58, %v1509_v56  ;;  %v1518_v25 = vrot.slane %v1510_v48, %v5207_v26  ;;  %3107 = vmatprep.subr.bf16.mxu0 %v4598_v33  ;;  %v4613_v12 = vld [vmem:[%s6307_s3 + $0x18c] ss:$16 sps:$4 sm:$0xff]   ;;  %v4614_v46 = vld [vmem:[%s6307_s3 + $0x540] ss:$16 sps:$4 sm:$0xff]   ;;  %v4611_v50 = vld [vmem:[%s6307_s3 + $0x188] ss:$16 sps:$4 sm:$0xff]   ;;  %v1778_v52 = vcombine.low %v5387_v1, %v5391_v5 }
 0x159   :  { %v1662_v6 = vcombine.low %v1653_v19, %v1660_v20  ;;  %3153 = vmatpush1.bf16.msra.mxu1 %v4581_v61  ;;  %v4622_v31 = vld [vmem:[%s6307_s3 + $0x524] ss:$16 sps:$4 sm:$0xff]   ;;  %v4619_v29 = vld [vmem:[%s6307_s3 + $0x16c] ss:$16 sps:$4 sm:$0xff]   ;;  %v1802_v55 = vrot.slane %v1780_v37, %v5207_v26  ;;  %v1809_v62 = vrot.slane %v4061_v54, %v5207_v26  ;;  %v4620_v58 = vld [vmem:[%s6307_s3 + $0x520] ss:$16 sps:$4 sm:$0xff]   ;;  %v1795_v61 = vrot.slane %v1779_v34, %v5207_v26 }
 0x15a   :  { %3154 = vmatprep.subr.bf16.mxu1 %v4589_v57  ;;  %v1669_v15 = vrot.slane %v1661_v3, %v5207_v26  ;;  %v1525_v17 = vrot.slane %v1511_v8, %v5207_v26  ;;  %v4617_v22 = vld [vmem:[%s6307_s3 + $0x168] ss:$16 sps:$4 sm:$0xff]   ;;  %v4628_v1 = vld [vmem:[%s6307_s3 + $0x504] ss:$16 sps:$4 sm:$0xff]   ;;  %v1680_v5 = vcombine.low %v5327_v11, %v5312_v35  ;;  %v4625_v57 = vld [vmem:[%s6307_s3 + $0x14c] ss:$16 sps:$4 sm:$0xff]   ;;  %v1788_v59 = vrot.slane %v1778_v52, %v5207_v26 }
 0x15b   :  { %v1676_v14 = vrot.slane %v1662_v6, %v5207_v26  ;;  %3108 = vmatpush2.bf16.msra.mxu0 %v4596_v47  ;;  %v1811_v60 = vcombine.low %v1802_v55, %v1809_v62  ;;  %v1679_v19 = vcombine.low %v5309_v32, %v5317_v51  ;;  %v4059_v9 = vcombine.high %v5312_v35, %v5320_v30  ;;  %v4626_v20 = vld [vmem:[%s6307_s3 + $0x500] ss:$16 sps:$4 sm:$0xff]   ;;  %v4623_v56 = vld [vmem:[%s6307_s3 + $0x148] ss:$16 sps:$4 sm:$0xff]   ;;  %v4634_v48 = vld [vmem:[%s6307_s3 + $0x2ec] ss:$16 sps:$4 sm:$0xff]  }
 0x15c   :  { %v5789_v13 = vcombine.low %v1518_v25, %v1525_v17  ;;  %3109 = vmatprep.subr.bf16.mxu0 %v4604_v45  ;;  %v1810_v11 = vcombine.low %v1788_v59, %v1795_v61  ;;  %v1678_v32 = vcombine.low %v5276_v42, %v5284_v44  ;;  %v1702_v35 = vrot.slane %v1680_v5, %v5207_v26  ;;  %v4631_v51 = vld [vmem:[%s6307_s3 + $0x12c] ss:$16 sps:$4 sm:$0xff]   ;;  %v4632_v6 = vld [vmem:[%s6307_s3 + $0x2e8] ss:$16 sps:$4 sm:$0xff]  }
 0x15d   :  { %v5787_v24 = vcombine.low %v1669_v15, %v1676_v14  ;;  %3155 = vmatpush1.bf16.msra.mxu1 %v4587_v4  ;;  %v1825_v30 = vrot.slane %v1811_v60, %v5207_v26  ;;  %v1695_v7 = vrot.slane %v1679_v19, %v5207_v26  ;;  %v1709_v3 = vrot.slane %v4059_v9, %v5207_v26  ;;  %v4629_v44 = vld [vmem:[%s6307_s3 + $0x128] ss:$16 sps:$4 sm:$0xff]   ;;  %v4640_v8 = vld [vmem:[%s6307_s3 + $0x2cc] ss:$16 sps:$4 sm:$0xff]  }
 0x15e   :  { %3156 = vmatprep.subr.bf16.mxu1 %v4595_v41  ;;  %3077 = vmatmul.mubr.bf16.gmra.mxu1 %v5789_v13  ;;  %v1818_v42 = vrot.slane %v1810_v11, %v5207_v26  ;;  %v1688_v4 = vrot.slane %v1678_v32, %v5207_v26  ;;  %v4637_v15 = vld [vmem:[%s6307_s3 + $0x10c] ss:$16 sps:$4 sm:$0xff]   ;;  %v4638_v25 = vld [vmem:[%s6307_s3 + $0x2c8] ss:$16 sps:$4 sm:$0xff]  }
 0x15f   :  { %3172 = vmatprep.mubr.bf16.mxu1 %v5446_v53  ;;  %v4607_v53 = vld [vmem:[%s6307_s3 + $0x1ac] ss:$16 sps:$4 sm:$0xff]   ;;  %3110 = vmatpush2.bf16.msra.mxu0 %v4602_v27  ;;  %v1711_v33 = vcombine.low %v1702_v35, %v1709_v3  ;;  %v4635_v17 = vld [vmem:[%s6307_s3 + $0x108] ss:$16 sps:$4 sm:$0xff]  }
 0x160   :  { %3111 = vmatprep.subr.bf16.mxu0 %v4610_v40  ;;  %v5897_v41 = vcombine.low %v1818_v42, %v1825_v30  ;;  %v1710_v14 = vcombine.low %v1688_v4, %v1695_v7  ;;  %v4643_v45 = vld [vmem:[%s6307_s3 + $0x4ec] ss:$16 sps:$4 sm:$0xff]   ;;  %v4644_v27 = vld [vmem:[%s6307_s3 + $0x2a8] ss:$16 sps:$4 sm:$0xff]  }
 0x161   :  { %3157 = vmatpush2.bf16.msra.mxu1 %v4593_v43  ;;  %v1725_v47 = vrot.slane %v1711_v33, %v5207_v26  ;;  %v4646_v43 = vld [vmem:[%s6307_s3 + $0x2ac] ss:$16 sps:$4 sm:$0xff]   ;;  %v4662_v54 = vld [vmem:[%s6307_s3 + $0x248] ss:$16 sps:$4 sm:$0xff]  }
 0x162   :  { %3158 = vmatprep.subr.bf16.mxu1 %v4601_v28  ;;  %v1718_v28 = vrot.slane %v1710_v14, %v5207_v26  ;;  %v4652_v26 = vld [vmem:[%s6307_s3 + $0x28c] ss:$16 sps:$4 sm:$0xff]   ;;  %v4674_v52 = vld [vmem:[%s6307_s3 + $0x208] ss:$16 sps:$4 sm:$0xff]  }
 0x163   :  { %3112 = vmatpush2.bf16.msra.mxu0 %v4608_v63  ;;  %v4650_v63 = vld [vmem:[%s6307_s3 + $0x288] ss:$16 sps:$4 sm:$0xff]   ;;  %v4664_v37 = vld [vmem:[%s6307_s3 + $0x24c] ss:$16 sps:$4 sm:$0xff]  }
 0x164   :  { %3113 = vmatprep.subr.bf16.mxu0 %v4616_v21  ;;  %v5924_v40 = vcombine.low %v1718_v28, %v1725_v47  ;;  %v4658_v21 = vld [vmem:[%s6307_s3 + $0x26c] ss:$16 sps:$4 sm:$0xff]   ;;  %v4671_v55 = vld [vmem:[%s6307_s3 + $0x448] ss:$16 sps:$4 sm:$0xff]  }
 0x165   :  { %3159 = vmatpush2.bf16.msra.mxu1 %v4599_v2  ;;  %v4641_v2 = vld [vmem:[%s6307_s3 + $0x4e8] ss:$16 sps:$4 sm:$0xff]   ;;  %v4670_v34 = vld [vmem:[%s6307_s3 + $0x22c] ss:$16 sps:$4 sm:$0xff]  }
 0x166   :  { %3160 = vmatprep.subr.bf16.mxu1 %v4607_v53  ;;  %v4649_v53 = vld [vmem:[%s6307_s3 + $0x4cc] ss:$16 sps:$4 sm:$0xff]   ;;  %v4680_v61 = vld [vmem:[%s6307_s3 + $0x3e8] ss:$16 sps:$4 sm:$0xff]  }
 0x167   :  { %3114 = vmatpush2.bf16.msra.mxu0 %v4614_v46  ;;  %v4659_v46 = vld [vmem:[%s6307_s3 + $0x488] ss:$16 sps:$4 sm:$0xff]   ;;  %v4682_v62 = vld [vmem:[%s6307_s3 + $0x3ec] ss:$16 sps:$4 sm:$0xff]  }
 0x168   :  { %3115 = vmatprep.subr.bf16.mxu0 %v4622_v31  ;;  %v4676_v31 = vld [vmem:[%s6307_s3 + $0x20c] ss:$16 sps:$4 sm:$0xff]   ;;  %v4683_v59 = vld [vmem:[%s6307_s3 + $0x408] ss:$16 sps:$4 sm:$0xff]  }
 0x169   :  { %3161 = vmatpush2.bf16.msra.mxu1 %v4605_v18  ;;  %v4647_v18 = vld [vmem:[%s6307_s3 + $0x4c8] ss:$16 sps:$4 sm:$0xff]   ;;  %v4685_v5 = vld [vmem:[%s6307_s3 + $0x40c] ss:$16 sps:$4 sm:$0xff]  }
 0x16a   :  { %3162 = vmatprep.subr.bf16.mxu1 %v4613_v12  ;;  %v4653_v12 = vld [vmem:[%s6307_s3 + $0x4a8] ss:$16 sps:$4 sm:$0xff]   ;;  %v4694_v60 = vld [vmem:[%s6307_s3 + $0x3ac] ss:$16 sps:$4 sm:$0xff]  }
 0x16b   :  { %3116 = vmatpush2.bf16.msra.mxu0 %v4620_v58  ;;  %v4679_v58 = vld [vmem:[%s6307_s3 + $0x42c] ss:$16 sps:$4 sm:$0xff]   ;;  %v4692_v9 = vld [vmem:[%s6307_s3 + $0x3a8] ss:$16 sps:$4 sm:$0xff]  }
 0x16c   :  { %3117 = vmatprep.subr.bf16.mxu0 %v4628_v1  ;;  %v4688_v1 = vld [vmem:[%s6307_s3 + $0x3cc] ss:$16 sps:$4 sm:$0xff]   ;;  %v4695_v32 = vld [vmem:[%s6307_s3 + $0x5c8] ss:$16 sps:$4 sm:$0xff]  }
 0x16d   :  { %3163 = vmatpush2.bf16.msra.mxu1 %v4611_v50  ;;  %v4668_v50 = vld [vmem:[%s6307_s3 + $0x228] ss:$16 sps:$4 sm:$0xff]   ;;  %v4691_v19 = vld [vmem:[%s6307_s3 + $0x5ec] ss:$16 sps:$4 sm:$0xff]  }
 0x16e   :  { %3164 = vmatprep.subr.bf16.mxu1 %v4619_v29  ;;  %v4673_v29 = vld [vmem:[%s6307_s3 + $0x44c] ss:$16 sps:$4 sm:$0xff]   ;;  %v4704_v30 = vld [vmem:[%s6307_s3 + $0x368] ss:$16 sps:$4 sm:$0xff]  }
 0x16f   :  { %3118 = vmatpush2.bf16.msra.mxu0 %v4626_v20  ;;  %v4689_v20 = vld [vmem:[%s6307_s3 + $0x5e8] ss:$16 sps:$4 sm:$0xff]   ;;  %v4700_v11 = vld [vmem:[%s6307_s3 + $0x38c] ss:$16 sps:$4 sm:$0xff]  }
 0x170   :  { %3193 = vmatprep.subr.bf16.mxu0 %v4634_v48  ;;  %v4698_v48 = vld [vmem:[%s6307_s3 + $0x388] ss:$16 sps:$4 sm:$0xff]   ;;  %v4706_v35 = vld [vmem:[%s6307_s3 + $0x36c] ss:$16 sps:$4 sm:$0xff]  }
 0x171   :  { %3165 = vmatpush2.bf16.msra.mxu1 %v4617_v22  ;;  %v4677_v22 = vld [vmem:[%s6307_s3 + $0x428] ss:$16 sps:$4 sm:$0xff]   ;;  %v4712_v3 = vld [vmem:[%s6307_s3 + $0x34c] ss:$16 sps:$4 sm:$0xff]  }
 0x172   :  { %3166 = vmatprep.subr.bf16.mxu1 %v4625_v57  ;;  %3120 = vmatmul.mubr.bf16.vlgmr.msra.gmra.mxu0 %v5787_v24  ;;  %v4686_v57 = vld [vmem:[%s6307_s3 + $0x3c8] ss:$16 sps:$4 sm:$0xff]   ;;  %v4715_v4 = vld [vmem:[%s6307_s3 + $0x56c] ss:$16 sps:$4 sm:$0xff]  }
 0x173   :  { %3129 = vmatprep.mubr.bf16.mxu0 %v5897_v41  ;;  %3194 = vmatpush1.bf16.msra.mxu0 %v4632_v6  ;;  %v4701_v7 = vld [vmem:[%s6307_s3 + $0x5a8] ss:$16 sps:$4 sm:$0xff]   ;;  %v4709_v6 = vld [vmem:[%s6307_s3 + $0x58c] ss:$16 sps:$4 sm:$0xff]  }
 0x174   :  { %3195 = vmatprep.subr.bf16.mxu0 %v4640_v8  ;;  %v4710_v42 = vld [vmem:[%s6307_s3 + $0x348] ss:$16 sps:$4 sm:$0xff]   ;;  %v4718_v8 = vld [vmem:[%s6307_s3 + $0x32c] ss:$16 sps:$4 sm:$0xff]  }
 0x175   :  { %3167 = vmatpush2.bf16.msra.mxu1 %v4623_v56  ;;  %v4697_v56 = vld [vmem:[%s6307_s3 + $0x5cc] ss:$16 sps:$4 sm:$0xff]   ;;  %v4716_v33 = vld [vmem:[%s6307_s3 + $0x328] ss:$16 sps:$4 sm:$0xff]  }
 0x176   :  { %3168 = vmatprep.subr.bf16.mxu1 %v4631_v51  ;;  %v4703_v51 = vld [vmem:[%s6307_s3 + $0x5ac] ss:$16 sps:$4 sm:$0xff]   ;;  %v4719_v47 = vld [vmem:[%s6307_s3 + $0x548] ss:$16 sps:$4 sm:$0xff]  }
 0x177   :  { %3196 = vmatpush1.bf16.msra.mxu0 %v4638_v25  ;;  %v4724_v14 = vld [vmem:[%s6307_s3 + $0x30c] ss:$16 sps:$4 sm:$0xff]  }
 0x178   :  { %3197 = vmatprep.subr.bf16.mxu0 %v4646_v43  ;;  %v4721_v25 = vld [vmem:[%s6307_s3 + $0x54c] ss:$16 sps:$4 sm:$0xff]  }
 0x179   :  { %3169 = vmatpush2.bf16.msra.mxu1 %v4629_v44  ;;  %v4707_v44 = vld [vmem:[%s6307_s3 + $0x588] ss:$16 sps:$4 sm:$0xff]   ;;  %v4727_v43 = vld [vmem:[%s6307_s3 + $0x52c] ss:$16 sps:$4 sm:$0xff]  }
 0x17a   :  { %3170 = vmatprep.subr.bf16.mxu1 %v4637_v15  ;;  %3130 = vmatmul.mubr.bf16.gmra.mxu0 %v5924_v40  ;;  %v4713_v15 = vld [vmem:[%s6307_s3 + $0x568] ss:$16 sps:$4 sm:$0xff]   ;;  %v4730_v28 = vld [vmem:[%s6307_s3 + $0x50c] ss:$16 sps:$4 sm:$0xff]  }
 0x17b   :  { %3198 = vmatpush1.bf16.msra.mxu0 %v4644_v27  ;;  %3225 = vmatprep.mubr.bf16.mxu0 %v5532_v49  ;;  %v4661_v49 = vld [vmem:[%s6307_s3 + $0x48c] ss:$16 sps:$4 sm:$0xff]   ;;  %v4728_v27 = vld [vmem:[%s6307_s3 + $0x508] ss:$16 sps:$4 sm:$0xff]  }
 0x17c   :  { %3199 = vmatprep.subr.bf16.mxu0 %v4652_v26  ;;  %v4739_v26 = vld [vmem:[%s6309_s5 + $0x68] sm:$0xff]  }
 0x17d   :  { %3171 = vmatpush2.bf16.msra.mxu1 %v4635_v17  ;;  %v4722_v17 = vld [vmem:[%s6307_s3 + $0x308] ss:$16 sps:$4 sm:$0xff]  }
 0x17e   :  { %3246 = vmatprep.subr.bf16.mxu1 %v4643_v45  ;;  %v4725_v45 = vld [vmem:[%s6307_s3 + $0x528] ss:$16 sps:$4 sm:$0xff]  }
 0x17f   :  { %3200 = vmatpush1.bf16.msra.mxu0 %v4650_v63  ;;  %v4740_v63 = vld [vmem:[%s6309_s5 + $0xe8] sm:$0xff]  }
 0x180   :  { %3173 = vmatmul.mubr.bf16.vlgmr.msra.gmra.mxu1 %v5341_v38  ;;  %v4655_v38 = vld [vmem:[%s6307_s3 + $0x4ac] ss:$16 sps:$4 sm:$0xff]   ;;  %3201 = vmatprep.subr.bf16.mxu0 %v4658_v21 }
 0x181   :  { %3182 = vmatprep.mubr.bf16.mxu1 %v5586_v0  ;;  %3247 = vmatpush1.bf16.msra.mxu1 %v4641_v2  ;;  %v4656_v0 = vld [vmem:[%s6307_s3 + $0x268] ss:$16 sps:$4 sm:$0xff]  }
 0x182   :  { %3248 = vmatprep.subr.bf16.mxu1 %v4649_v53  ;;  %v4733_v2 = vld [vmem:[%s6309_s5 + $0x38] sm:$0xff]   ;;  %v4738_v53 = vld [vmem:[%s6309_s5 + $0xb0] sm:$0xff]   ;;  %v4742_v21 = vld [vmem:[%s6309_s5 + $0xa8] sm:$0xff]  }
 0x183   :  { %3202 = vmatpush1.bf16.msra.mxu0 %v4656_v0  ;;  %v4744_v0 = vld [vmem:[%s6309_s5 + $0xe0] sm:$0xff]  }
 0x184   :  { %3203 = vmatprep.subr.bf16.mxu0 %v4664_v37  ;;  %v4747_v37 = vld [vmem:[%s6309_s5 + $0x58] sm:$0xff]  }
 0x185   :  { %3249 = vmatpush1.bf16.msra.mxu1 %v4647_v18  ;;  %v4741_v18 = vld [vmem:[%s6309_s5 + $0x28] sm:$0xff]  }
 0x186   :  { %3250 = vmatprep.subr.bf16.mxu1 %v4655_v38  ;;  %v4743_v38 = vld [vmem:[%s6309_s5 + $0x60] sm:$0xff]  }
 0x187   :  { %3204 = vmatpush1.bf16.msra.mxu0 %v4662_v54  ;;  %v4748_v54 = vld [vmem:[%s6309_s5 + $0xd8] sm:$0xff]  }
 0x188   :  { %3183 = vmatmul.mubr.bf16.gmra.mxu1 %v5612_v39  ;;  %v4667_v39 = vld [vmem:[%s6307_s3 + $0x46c] ss:$16 sps:$4 sm:$0xff]   ;;  %3205 = vmatprep.subr.bf16.mxu0 %v4670_v34 }
 0x189   :  { %3251 = vmatpush1.bf16.msra.mxu1 %v4653_v12  ;;  %3278 = vmatprep.mubr.bf16.mxu1 %v5642_v10  ;;  %v4665_v10 = vld [vmem:[%s6307_s3 + $0x468] ss:$16 sps:$4 sm:$0xff]   ;;  %v4745_v12 = vld [vmem:[%s6309_s5 + $0x20] sm:$0xff]  }
 0x18a   :  { %3252 = vmatprep.subr.bf16.mxu1 %v4661_v49  ;;  %v4746_v49 = vld [vmem:[%s6309_s5 + $0xa0] sm:$0xff]   ;;  %v4750_v34 = vld [vmem:[%s6309_s5 + $0x98] sm:$0xff]  }
 0x18b   :  { %3206 = vmatpush1.bf16.msra.mxu0 %v4668_v50  ;;  %v4752_v50 = vld [vmem:[%s6309_s5 + $0xd0] sm:$0xff]  }
 0x18c   :  { %3207 = vmatprep.subr.bf16.mxu0 %v4676_v31  ;;  %v4754_v31 = vld [vmem:[%s6309_s5 + $0x90] sm:$0xff]  }
 0x18d   :  { %3253 = vmatpush1.bf16.msra.mxu1 %v4659_v46  ;;  %v4749_v46 = vld [vmem:[%s6309_s5 + $0x18] sm:$0xff]  }
 0x18e   :  { %3254 = vmatprep.subr.bf16.mxu1 %v4667_v39  ;;  %v4751_v39 = vld [vmem:[%s6309_s5 + $0x50] sm:$0xff]  }
 0x18f   :  { %3208 = vmatpush1.bf16.msra.mxu0 %v4674_v52  ;;  %v4756_v52 = vld [vmem:[%s6309_s5 + $0xc8] sm:$0xff]  }
 0x190   :  { %3209 = vmatprep.subr.bf16.mxu0 %v4682_v62  ;;  %v4758_v62 = vld [vmem:[%s6309_s5 + $0x88] sm:$0xff]  }
 0x191   :  { %3255 = vmatpush1.bf16.msra.mxu1 %v4665_v10  ;;  %v4753_v10 = vld [vmem:[%s6309_s5 + $0x10] sm:$0xff]  }
 0x192   :  { %3256 = vmatprep.subr.bf16.mxu1 %v4673_v29  ;;  %v4755_v29 = vld [vmem:[%s6309_s5 + $0x48] sm:$0xff]  }
 0x193   :  { %3210 = vmatpush2.bf16.msra.mxu0 %v4680_v61 }
 0x194   :  { %3211 = vmatprep.subr.bf16.mxu0 %v4688_v1  ;;  %v4761_v1 = vld [vmem:[%s6309_s5] sm:$0xff]  }
 0x195   :  { %3257 = vmatpush1.bf16.msra.mxu1 %v4671_v55  ;;  %v4757_v55 = vld [vmem:[%s6309_s5 + $0x8] sm:$0xff]  }
 0x196   :  { %3258 = vmatprep.subr.bf16.mxu1 %v4679_v58  ;;  %v4759_v58 = vld [vmem:[%s6309_s5 + $0x40] sm:$0xff]  }
 0x197   :  { %3212 = vmatpush2.bf16.msra.mxu0 %v4686_v57 }
 0x198   :  { %3213 = vmatprep.subr.bf16.mxu0 %v4694_v60 }
 0x199   :  { %3259 = vmatpush1.bf16.msra.mxu1 %v4677_v22  ;;  %v4760_v22 = vld [vmem:[%s6309_s5 + $0xc0] sm:$0xff]  }
 0x19a   :  { %3260 = vmatprep.subr.bf16.mxu1 %v4685_v5  ;;  %v4762_v5 = vld [vmem:[%s6309_s5 + $0x80] sm:$0xff]  }
 0x19b   :  { %3214 = vmatpush2.bf16.msra.mxu0 %v4692_v9 }
 0x19c   :  { %3215 = vmatprep.subr.bf16.mxu0 %v4700_v11 }
 0x19d   :  { %3261 = vmatpush1.bf16.msra.mxu1 %v4683_v59  ;;  %v4772_v59 = vmov 0.0  }
 0x19e   :  { %3262 = vmatprep.subr.bf16.mxu1 %v4691_v19 }
 0x19f   :  { %3216 = vmatpush2.bf16.msra.mxu0 %v4698_v48 }
 0x1a0   :  { %3217 = vmatprep.subr.bf16.mxu0 %v4706_v35 }
 0x1a1   :  { %3263 = vmatpush2.bf16.msra.mxu1 %v4689_v20 }
 0x1a2   :  { %3264 = vmatprep.subr.bf16.mxu1 %v4697_v56 }
 0x1a3   :  { %3218 = vmatpush2.bf16.msra.mxu0 %v4704_v30 }
 0x1a4   :  { %3219 = vmatprep.subr.bf16.mxu0 %v4712_v3 }
 0x1a5   :  { %3265 = vmatpush2.bf16.msra.mxu1 %v4695_v32 }
 0x1a6   :  { %3266 = vmatprep.subr.bf16.mxu1 %v4703_v51 }
 0x1a7   :  { %3220 = vmatpush2.bf16.msra.mxu0 %v4710_v42 }
 0x1a8   :  { %3221 = vmatprep.subr.bf16.mxu0 %v4718_v8 }
 0x1a9   :  { %3267 = vmatpush2.bf16.msra.mxu1 %v4701_v7 }
 0x1aa   :  { %3268 = vmatprep.subr.bf16.mxu1 %v4709_v6 }
 0x1ab   :  { %3222 = vmatpush2.bf16.msra.mxu0 %v4716_v33 }
 0x1ac   :  { %3223 = vmatprep.subr.bf16.mxu0 %v4724_v14 }
 0x1ad   :  { %3269 = vmatpush2.bf16.msra.mxu1 %v4707_v44 }
 0x1ae   :  { %3270 = vmatprep.subr.bf16.mxu1 %v4715_v4 }
 0x1af   :  { %3224 = vmatpush2.bf16.msra.mxu0 %v4722_v17 }
 0x1b1   :  { %3271 = vmatpush2.bf16.msra.mxu1 %v4713_v15 }
 0x1b2   :  { %3272 = vmatprep.subr.bf16.mxu1 %v4721_v25  ;;  %3226 = vmatmul.mubr.bf16.vlgmr.msra.gmra.mxu0 %v5561_v36  ;;  %v4731_v36 = vld [vmem:[%s6309_s5 + $0x78] sm:$0xff]  }
 0x1b3   :  { %3235 = vmatprep.mubr.bf16.mxu0 %v5734_v23  ;;  %v4732_v23 = vld [vmem:[%s6309_s5 + $0xf8] sm:$0xff]   ;;  %4296 = vmatprep.subr.bf16.mxu0 %v4731_v36 }
 0x1b4   :  { %4297 = vmatpush3.bf16.msra.mxu0 %v4733_v2 }
 0x1b5   :  { %3273 = vmatpush2.bf16.msra.mxu1 %v4719_v47 }
 0x1b6   :  { %3274 = vmatprep.subr.bf16.mxu1 %v4727_v43 }
 0x1b9   :  { %3275 = vmatpush2.bf16.msra.mxu1 %v4725_v45 }
 0x1ba   :  { %3276 = vmatprep.subr.bf16.mxu1 %v4730_v28  ;;  %3236 = vmatmul.mubr.bf16.gmra.mxu0 %v5789_v13  ;;  %v4735_v13 = vld [vmem:[%s6309_s5 + $0x70] sm:$0xff]  }
 0x1bb   :  { %4298 = vmatprep.subr.bf16.mxu0 %v4735_v13 }
 0x1bd   :  { %3277 = vmatpush2.bf16.msra.mxu1 %v4728_v27 }
 0x1be   :  { %4318 = vmatprep.subr.bf16.mxu1 %v4732_v23 }
 0x1c0   :  { %3279 = vmatmul.mubr.bf16.vlgmr.msra.gmra.mxu1 %v5787_v24  ;;  %v4734_v24 = vld [vmem:[%s6309_s5 + $0xb8] sm:$0xff]  }
 0x1c1   :  { %3288 = vmatprep.mubr.bf16.mxu1 %v5897_v41  ;;  %4319 = vmatpush3.bf16.msra.mxu1 %v4734_v24  ;;  %v4736_v41 = vld [vmem:[%s6309_s5 + $0xf0] sm:$0xff]  }
 0x1c2   :  { %4320 = vmatprep.subr.bf16.mxu1 %v4736_v41 }
 0x1c5   :  { %4321 = vmatpush3.bf16.msra.mxu1 %v4738_v53 }
 0x1c6   :  { %4322 = vmatprep.subr.bf16.mxu1 %v4740_v63 }
 0x1c8   :  { %3289 = vmatmul.mubr.bf16.gmra.mxu1 %v5924_v40  ;;  %v4737_v40 = vld [vmem:[%s6309_s5 + $0x30] sm:$0xff]  }
 0x1c9   :  { %4299 = vmatpush3.bf16.msra.mxu0 %v4737_v40  ;;  %4323 = vmatpush3.bf16.msra.mxu1 %v4742_v21 }
 0x1ca   :  { %4300 = vmatprep.subr.bf16.mxu0 %v4739_v26  ;;  %4324 = vmatprep.subr.bf16.mxu1 %v4744_v0 }
 0x1cd   :  { %4301 = vmatpush3.bf16.msra.mxu0 %v4741_v18  ;;  %4325 = vmatpush3.bf16.msra.mxu1 %v4746_v49 }
 0x1ce   :  { %4302 = vmatprep.subr.bf16.mxu0 %v4743_v38  ;;  %4326 = vmatprep.subr.bf16.mxu1 %v4748_v54 }
 0x1d1   :  { %4303 = vmatpush3.bf16.msra.mxu0 %v4745_v12  ;;  %4327 = vmatpush3.bf16.msra.mxu1 %v4750_v34 }
 0x1d2   :  { %4304 = vmatprep.subr.bf16.mxu0 %v4747_v37  ;;  %4328 = vmatprep.subr.bf16.mxu1 %v4752_v50 }
 0x1d5   :  { %4305 = vmatpush3.bf16.msra.mxu0 %v4749_v46  ;;  %4329 = vmatpush3.bf16.msra.mxu1 %v4754_v31 }
 0x1d6   :  { %4306 = vmatprep.subr.bf16.mxu0 %v4751_v39  ;;  %4330 = vmatprep.subr.bf16.mxu1 %v4756_v52 }
 0x1d9   :  { %4307 = vmatpush3.bf16.msra.mxu0 %v4753_v10  ;;  %4331 = vmatpush3.bf16.msra.mxu1 %v4758_v62  ;;  %v4773_v62 = vmov 1983009808  }
 0x1da   :  { %4308 = vmatprep.subr.bf16.mxu0 %v4755_v29  ;;  %4332 = vmatprep.subr.bf16.mxu1 %v4760_v22 }
 0x1dd   :  { %4309 = vmatpush3.bf16.msra.mxu0 %v4757_v55  ;;  %4333 = vmatpush3.bf16.msra.mxu1 %v4762_v5 }
 0x1de   :  { %4310 = vmatprep.subr.bf16.mxu0 %v4759_v58  ;;  %v3332_v58 = vunpack.c.l.s4 %v4773_v62 }
 0x1e1   :  { %4311 = vmatpush3.bf16.msra.mxu0 %v4761_v1 }
 0x1e2   :  { %4345 = vmatprep.subr.bf16.mxu0 %v4772_v59 }
 0x1f0   :  { %v3015_v61 = vpop.f32.mrf.mxu0 }
 0x1f2   :  { %v3017_v57 = vpop.f32.mrf.mxu0 }
 0x1f4   :  { %v3019_v60 = vpop.f32.mrf.mxu0 }
 0x1f6   :  { %v3021_v9 = vpop.f32.mrf.mxu0 }
 0x200   :  { %v3068_v19 = vpop.f32.mrf.mxu1 }
 0x201   :  { %v3069_v63 = vadd.f32 %v3068_v19, %v3015_v61 }
 0x202   :  { %v3070_v20 = vpop.f32.mrf.mxu1 }
 0x203   :  { %v3071_v18 = vadd.f32 %v3070_v20, %v3017_v57  ;;  %v4254_v20 = vld [vmem:[%s6311_s4] ss:$0 sm:$0xff] }
 0x204   :  { %v3072_v56 = vpop.f32.mrf.mxu1 }
 0x205   :  { %v3073_v34 = vadd.f32 %v3072_v56, %v3019_v60 }
 0x206   :  { %v6203_v11 = vpop.f32.mrf.mxu0  ;;  %v3074_v32 = vpop.f32.mrf.mxu1 }
 0x207   :  { %v3075_v39 = vadd.f32 %v3074_v32, %v3021_v9 }
 0x208   :  { %v3027_v48 = vpop.f32.mrf.mxu0 }
 0x20a   :  { %v6205_v35 = vpop.f32.mrf.mxu0 }
 0x20c   :  { %v6207_v30 = vpop.f32.mrf.mxu0 }
 0x21e   :  { %v3078_v51 = vpop.f32.mrf.mxu1 }
 0x220   :  { %v3080_v7 = vpop.f32.mrf.mxu1 }
 0x221   :  { %v3081_v19 = vadd.f32 %v3080_v7, %v3027_v48 }
 0x222   :  { %v6209_v6 = vpop.f32.mrf.mxu1 }
 0x223   :  { %v3083_v7 = vadd.f32 %v6209_v6, %v6205_v35 }
 0x224   :  { %v6211_v44 = vpop.f32.mrf.mxu1 }
 0x232   :  { %v3121_v3 = vpop.f32.mrf.mxu0 }
 0x233   :  { %v3122_v49 = vadd.f32 %v3121_v3, %v3069_v63 }
 0x234   :  { %v3123_v42 = vpop.f32.mrf.mxu0 }
 0x235   :  { %v3124_v37 = vadd.f32 %v3123_v42, %v3071_v18  ;;  %v3079_v42 = vadd.f32 %v3078_v51, %v6203_v11 }
 0x236   :  { %v3125_v8 = vpop.f32.mrf.mxu0 }
 0x237   :  { %v3126_v22 = vadd.f32 %v3125_v8, %v3073_v34 }
 0x238   :  { %v3127_v33 = vpop.f32.mrf.mxu0 }
 0x239   :  { %v3128_v1 = vadd.f32 %v3127_v33, %v3075_v39 }
 0x23a   :  { %v3131_v14 = vpop.f32.mrf.mxu0 }
 0x23c   :  { %v3133_v17 = vpop.f32.mrf.mxu0 }
 0x23e   :  { %v6213_v43 = vpop.f32.mrf.mxu0 }
 0x240   :  { %v3174_v4 = vpop.f32.mrf.mxu1  ;;  %v6215_v28 = vpop.f32.mrf.mxu0 }
 0x242   :  { %v3176_v15 = vpop.f32.mrf.mxu1 }
 0x244   :  { %v3178_v25 = vpop.f32.mrf.mxu1 }
 0x246   :  { %v3180_v47 = vpop.f32.mrf.mxu1 }
 0x248   :  { %v3184_v45 = vpop.f32.mrf.mxu1 }
 0x24a   :  { %v3186_v27 = vpop.f32.mrf.mxu1 }
 0x24c   :  { %v3188_v2 = vpop.f32.mrf.mxu1 }
 0x24e   :  { %v3190_v41 = vpop.f32.mrf.mxu1 }
 0x272   :  { %v3227_v36 = vpop.f32.mrf.mxu0 }
 0x273   :  { %v3228_v40 = vadd.f32 %v3227_v36, %v3174_v4  ;;  %v3134_v4 = vadd.f32 %v3133_v17, %v3081_v19  ;;  %v3136_v17 = vadd.f32 %v6213_v43, %v3083_v7 }
 0x274   :  { %v3229_v23 = vpop.f32.mrf.mxu0 }
 0x275   :  { %v3230_v21 = vadd.f32 %v3229_v23, %v3176_v15  ;;  %v3333_v15 = vunpack.c.0.s8 %v3332_v58 }
 0x276   :  { %v3231_v24 = vpop.f32.mrf.mxu0 }
 0x277   :  { %v3232_v54 = vadd.f32 %v3231_v24, %v3178_v25  ;;  %v3132_v24 = vadd.f32 %v3131_v14, %v3079_v42 }
 0x278   :  { %v3233_v13 = vpop.f32.mrf.mxu0 }
 0x279   :  { %v3234_v31 = vadd.f32 %v3233_v13, %v3180_v47 }
 0x27a   :  { %v3237_v53 = vpop.f32.mrf.mxu0 }
 0x27b   :  { %v3238_v60 = vadd.f32 %v3237_v53, %v3184_v45  ;;  %v3085_v45 = vadd.f32 %v6211_v44, %v6207_v30  ;;  %v6227_v53 = vsub.s32 %v3333_v15, %v5202_v16 }
 0x27c   :  { %v3239_v12 = vpop.f32.mrf.mxu0 }
 0x27d   :  { %v3240_v32 = vadd.f32 %v3239_v12, %v3186_v27  ;;  %v3138_v63 = vadd.f32 %v6215_v28, %v3085_v45 }
 0x27e   :  { %v3241_v61 = vpop.f32.mrf.mxu0 }
 0x27f   :  { %v3242_v23 = vadd.f32 %v3241_v61, %v3188_v2 }
 0x280   :  { %v3280_v26 = vpop.f32.mrf.mxu1  ;;  %v3243_v47 = vpop.f32.mrf.mxu0 }
 0x281   :  { %v3281_v38 = vadd.f32 %v3280_v26, %v3228_v40  ;;  %v3244_v40 = vadd.f32 %v3243_v47, %v3190_v41 }
 0x282   :  { %v3282_v0 = vpop.f32.mrf.mxu1 }
 0x283   :  { %v3283_v46 = vadd.f32 %v3282_v0, %v3230_v21  ;;  %v3299_v10 = vmax.f32 %v3122_v49, %v3281_v38 }
 0x284   :  { %v3284_v50 = vpop.f32.mrf.mxu1 }
 0x285   :  { %v3300_v29 = vmax.f32 %v3124_v37, %v3283_v46  ;;  %v3285_v52 = vadd.f32 %v3284_v50, %v3232_v54 }
 0x286   :  { %v3286_v55 = vpop.f32.mrf.mxu1 }
 0x287   :  { %v3307_v5 = vmax.f32 %v3299_v10, %v3300_v29  ;;  %v3287_v57 = vadd.f32 %v3286_v55, %v3234_v31  ;;  %v3301_v56 = vmax.f32 %v3126_v22, %v3285_v52 }
 0x288   :  { %v3290_v9 = vpop.f32.mrf.mxu1 }
 0x289   :  { %v3302_v3 = vmax.f32 %v3128_v1, %v3287_v57  ;;  %v3291_v25 = vadd.f32 %v3290_v9, %v3238_v60  ;;  %v3318_v33 = vadd.f32 %v4254_v20, %v3307_v5 }
 0x28a   :  { %v3292_v8 = vpop.f32.mrf.mxu1 }
 0x28b   :  { %v3308_v36 = vmax.f32 %v3301_v56, %v3302_v3  ;;  %v3293_v48 = vadd.f32 %v3292_v8, %v3240_v32  ;;  %v3303_v26 = vmax.f32 %v3132_v24, %v3291_v25  ;;  %v3322_v18 = vmax.f32 %v3318_v33, 0.0 }
 0x28c   :  { %v3294_v27 = vpop.f32.mrf.mxu1 }
 0x28d   :  { %v3319_v13 = vadd.f32 %v4254_v20, %v3308_v36  ;;  %v3304_v11 = vmax.f32 %v3134_v4, %v3293_v48  ;;  %v3295_v51 = vadd.f32 %v3294_v27, %v3242_v23 }
 0x28e   :  { %v3296_v2 = vpop.f32.mrf.mxu1 }
 0x28f   :  { %v3323_v35 = vmax.f32 %v3319_v13, 0.0  ;;  %v3297_v6 = vadd.f32 %v3296_v2, %v3244_v40  ;;  %v3309_v21 = vmax.f32 %v3303_v26, %v3304_v11  ;;  %v3305_v14 = vmax.f32 %v3136_v17, %v3295_v51 }
 0x291   :  { %v3326_v30 = vpack.c.bf16 %v3323_v35, %v3322_v18  ;;  %v4255_v44 = vpack.c.bf16 %v3323_v35, %v3323_v35  ;;  %v3306_v38 = vmax.f32 %v3138_v63, %v3297_v6  ;;  %v3320_v12 = vadd.f32 %v4254_v20, %v3309_v21 }
 0x293   :  { %v3337_v41 = vrot.slane %v3326_v30, %v6227_v53  ;;  %v3344_v0 = vrot.slane %v4255_v44, %v6227_v53  ;;  %v3310_v43 = vmax.f32 %v3305_v14, %v3306_v38  ;;  %v3324_v10 = vmax.f32 %v3320_v12, 0.0 }
 0x295   :  { %v3345_v16 = vcombine.high %v3337_v41, %v3337_v41  ;;  %v3346_v49 = vcombine.high %v3344_v0, %v3344_v0  ;;  %v3370_v37 = vrot.slane %v3337_v41, %v6227_v53  ;;  %v3384_v28 = vrot.slane %v3344_v0, %v6227_v53 }
 0x296   :  { %v3321_v54 = vadd.f32 %v4254_v20, %v3310_v43 }
 0x297   :  { %v3377_v46 = vrot.slane %v3345_v16, %v6227_v53  ;;  %v3391_v34 = vrot.slane %v3346_v49, %v6227_v53  ;;  %v3420_v39 = vunpack.c.l.b16 %v3370_v37  ;;  %v3422_v50 = vunpack.c.l.b16 %v3384_v28 }
 0x298   :  { %v3325_v31 = vmax.f32 %v3321_v54, 0.0 }
 0x299   :  { %v3421_v29 = vunpack.c.l.b16 %v3377_v46  ;;  %v6236_v52 = vunpack.c.l.b16 %v3391_v34  ;;  %v3431_v55 = vrot.slane %v3422_v50, 6  ;;  %v3451_v62 = vrot.slane %v3420_v39, 1 }
 0x29a   :  { %v3467_v58 = vrot.slane %v3420_v39, 2  ;;  %v3483_v61 = vrot.slane %v3420_v39, 3  ;;  %v3327_v22 = vpack.c.bf16 %v3325_v31, %v3324_v10  ;;  %v4256_v1 = vpack.c.bf16 %v3325_v31, %v3325_v31 }
 0x29b   :  { %v3428_v5 = vrot.slane %v3421_v29, 7  ;;  %v3434_v57 = vrot.slane %v6236_v52, 5  ;;  %v3468_v19 = vrot.slane %v3421_v29, 1  ;;  %v3471_v20 = vrot.slane %v6236_v52, 7 }
 0x29c   :  { %v3354_v60 = vrot.slane %v3327_v22, %v6227_v53  ;;  %v3361_v9 = vrot.slane %v4256_v1, %v6227_v53  ;;  %v3452_v56 = vsel %vm3429_vm1, %v3421_v29, %v3451_v62  ;;  %v3453_v32 = vrot.slane %v3422_v50, 7 }
 0x29d   :  { %v3430_v3 = vsel %vm3429_vm1, %v3428_v5, %v3420_v39  ;;  %v3455_v42 = vrot.slane %v6236_v52, 6  ;;  %v3484_v4 = vrot.slane %v3421_v29, 2  ;;  %v3486_v15 = vrot.slane %v3422_v50, 1 }
 0x29e   :  { %v3362_v25 = vcombine.high %v3354_v60, %v3354_v60  ;;  %v3363_v47 = vcombine.high %v3361_v9, %v3361_v9  ;;  %v3398_v8 = vrot.slane %v3354_v60, %v6227_v53  ;;  %v3412_v33 = vrot.slane %v3361_v9, %v6227_v53 }
 0x29f   :  { %v3454_v36 = vsel %vm3432_vm2, %v3453_v32, %v3452_v56  ;;  %v3485_v23 = vsel %vm3429_vm1, %v3484_v4, %v3483_v61  ;;  %v3433_v48 = vsel %vm3432_vm2, %v3431_v55, %v3430_v3  ;;  %v3469_v7 = vsel %vm3429_vm1, %v3468_v19, %v3467_v58  ;;  %v4764_v32 = vld [vmem:[%s6310_s7 + $0x10] sm:$0xff]   ;;  %v4765_v3 = vld [vmem:[%s6310_s7 + $0x8] sm:$0xff]  }
 0x2a0   :  { %v3405_v45 = vrot.slane %v3362_v25, %v6227_v53  ;;  %v3419_v24 = vrot.slane %v3363_v47, %v6227_v53  ;;  %v3424_v27 = vunpack.c.l.b16 %v3398_v8  ;;  %v3426_v13 = vunpack.c.l.b16 %v3412_v33 }
 0x2a1   :  { %v3456_v40 = vsel %vm3435_vm3, %v3455_v42, %v3454_v36  ;;  %v3487_v11 = vsel %vm3432_vm2, %v3486_v15, %v3485_v23  ;;  %v3436_v51 = vsel %vm3435_vm3, %v3434_v57, %v3433_v48  ;;  %v3470_v17 = vsel %vm3432_vm2, %v3422_v50, %v3469_v7  ;;  %v4763_v50 = vld [vmem:[%s6310_s7 + $0x18] ss:$0 sps:$4 sm:$0x11]   ;;  %v4766_v42 = vld [vmem:[%s6310_s7] sm:$0xff]  }
 0x2a2   :  { %v3425_v26 = vunpack.c.l.b16 %v3405_v45  ;;  %v3427_v2 = vunpack.c.l.b16 %v3419_v24  ;;  %v3437_v63 = vrot.slane %v3424_v27, 4  ;;  %v3473_v18 = vrot.slane %v3424_v27, 6  ;;  %v4257_v15 = vld [vmem:[%s6312_s6] ss:$0 sm:$0xff] }
 0x2a3   :  { %v3457_v35 = vrot.slane %v3424_v27, 5  ;;  %v3461_v6 = vrot.slane %v3426_v13, 3  ;;  %v3488_v53 = vsel %vm3435_vm3, %v6236_v52, %v3487_v11  ;;  %v3489_v21 = vrot.slane %v3424_v27, 7 }
 0x2a4   :  { %v3459_v30 = vrot.slane %v3425_v26, 4  ;;  %v3463_v44 = vrot.slane %v3427_v2, 2  ;;  %v3491_v14 = vrot.slane %v3425_v26, 6  ;;  %v3493_v38 = vrot.slane %v3426_v13, 5 }
 0x2a5   :  { %v3458_v41 = vsel %vm3438_vm4, %v3457_v35, %v3456_v40  ;;  %v3490_v0 = vsel %vm3438_vm4, %v3489_v21, %v3488_v53  ;;  %v3495_v43 = vrot.slane %v3427_v2, 4  ;;  %v3439_v12 = vsel %vm3438_vm4, %v3437_v63, %v3436_v51  ;;  %v4290_v40 = vld [vmem:[%s6313_s8] ss:$0 sm:$0xff] }
 0x2a6   :  { %v3460_v16 = vsel %vm3441_vm5, %v3459_v30, %v3458_v41  ;;  %v3492_v49 = vsel %vm3441_vm5, %v3491_v14, %v3490_v0  ;;  %v3440_v37 = vrot.slane %v3425_v26, 3  ;;  %v3443_v28 = vrot.slane %v3426_v13, 2 }
 0x2a7   :  { %v3462_v54 = vsel %vm3444_vm6, %v3461_v6, %v3460_v16  ;;  %v3494_v46 = vsel %vm3444_vm6, %v3493_v38, %v3492_v49  ;;  %v3446_v34 = vrot.slane %v3427_v2, 1  ;;  %v3472_v39 = vsel %vm3435_vm3, %v3471_v20, %v3470_v17 }
 0x2a8   :  { %v3464_v10 = vsel %vm3447_vm7, %v3463_v44, %v3462_v54  ;;  %v3496_v31 = vsel %vm3447_vm7, %v3495_v43, %v3494_v46  ;;  %v3442_v29 = vsel %vm3441_vm5, %v3440_v37, %v3439_v12  ;;  %v3474_v52 = vsel %vm3438_vm4, %v3473_v18, %v3472_v39 }
 0x2a9   :  { %v3465_v55 = vpack.c.b16 %v3464_v10, %v3464_v10  ;;  %v3497_v62 = vpack.c.b16 %v3496_v31, %v3496_v31  ;;  %v3445_v58 = vsel %vm3444_vm6, %v3443_v28, %v3442_v29  ;;  %v3475_v61 = vrot.slane %v3425_v26, 5 }
 0x2aa   :  { %v3448_v22 = vsel %vm3447_vm7, %v3446_v34, %v3445_v58  ;;  %v3477_v1 = vrot.slane %v3426_v13, 4  ;;  %v3479_v19 = vrot.slane %v3427_v2, 3  ;;  %v3885_v20 = vsel %vm3883_vm8, %v4763_v50, 0 }
 0x2ab   :  { %3794 = vmatprep.mubr.bf16.mxu0 %v3465_v55  ;;  %3834 = vmatprep.mubr.bf16.mxu1 %v3497_v62  ;;  %v3449_v5 = vpack.c.b16 %v3448_v22, %v3448_v22  ;;  %v3476_v57 = vsel %vm3441_vm5, %v3475_v61, %v3474_v52 }
 0x2ac   :  { %v3478_v60 = vsel %vm3444_vm6, %v3477_v1, %v3476_v57 }
 0x2ad   :  { %3795 = vmatmul.mubr.bf16.vlgmr.msra.gmra.mxu0 %v3449_v5  ;;  %v3480_v9 = vsel %vm3447_vm7, %v3479_v19, %v3478_v60 }
 0x2ae   :  { %v3481_v56 = vpack.c.b16 %v3480_v9, %v3480_v9  ;;  %4346 = vmatpush3.bf16.msra.mxu0 %v3885_v20  ;;  %4353 = vmatprep.mubr.msk.bf16.mxu0 %vm4774_vm9, %v4772_v59 }
 0x2af   :  { %4347 = vmatprep.subr.bf16.mxu0 %v4772_v59 }
 0x2b0   :  { %3835 = vmatmul.mubr.bf16.vlgmr.msra.gmra.mxu1 %v3481_v56 }
 0x2b2   :  { %4348 = vmatpush3.bf16.msra.mxu0 %v4764_v32 }
 0x2b3   :  { %4349 = vmatprep.subr.bf16.mxu0 %v4772_v59 }
 0x2b6   :  { %4350 = vmatpush3.bf16.msra.mxu0 %v4765_v3 }
 0x2b7   :  { %4351 = vmatprep.subr.bf16.mxu0 %v4772_v59 }
 0x2ba   :  { %4352 = vmatpush3.bf16.msra.mxu0 %v4766_v42 }
 0x36d   :  { %v4312_v4 = vpop.f32.mrf.mxu0 }
 0x36f   :  { %v4313_v25 = vpop.f32.mrf.mxu0 }
 0x370   :  { %v4334_v47 = vpop.f32.mrf.mxu1  ;;  %v4314_v8 = vadd.f32 %v4313_v25, %v4312_v4 }
 0x371   :  { %v4315_v33 = vpop.f32.mrf.mxu0 }
 0x372   :  { %v3797_v36 = vadd.f32 %v4314_v8, %v4257_v15  ;;  %v4335_v23 = vpop.f32.mrf.mxu1 }
 0x373   :  { %v4336_v48 = vadd.f32 %v4335_v23, %v4334_v47  ;;  %v4316_v7 = vpop.f32.mrf.mxu0 }
 0x374   :  { %v4337_v45 = vpop.f32.mrf.mxu1 }
 0x375   :  { %v3837_v24 = vadd.f32 %v4336_v48, %v3797_v36 }
 0x376   :  { %v4338_v27 = vpop.f32.mrf.mxu1 }
 0x377   :  { %v3842_v13 = vmax.f32 %v3837_v24, 0.0 }
 0x379   :  { %v3843_v59 = vpack.c.bf16 %v3842_v13, %v3842_v13 }
 0x37b   :  { %4354 = vmatmul.mubr.msk.bf16.vlgmr.msra.gmra.mxu0 %vm3879_vm10, %v3843_v59 }
 0x43b   :  { %v3921_v11 = vpop.f32.mrf.mxu0 }
 0x43c   :  { %v3922_v51 = vadd.f32 %v4290_v40, %v3921_v11 }
 0x43d   :  { %v4355_v17 = vpop.f32.mrf.mxu0 }
 0x43e   :  { %v3928_v26 = vsel %vm3927_vm11, %v3922_v51, -inf }
 0x43f   :  { %3929 = vmax.xlane.f32.xlu0 %v3928_v26  ;;  %v3924_v2 = vpop.f32.mrf.mxu0 }
 0x441   :  { %v4356_v63 = vpop.f32.mrf.mxu0 }
 0x4c8   :  { %v3930_v18 = vpop.xlane.xlu0 %3929 }
 0x4c9   :  { %v3931_v35 = vsub.f32 %v3922_v51, %v3930_v18 }
 0x4cb   :  { %v3932_v6 = vmul.f32 1.442695, %v3931_v35 }
 0x4cd   :  { %4767 = vpow2.f32 %v3932_v6 }
 0x4da   :  { %v4768_v53 = vpop.eup %4767 }
 0x4db   :  { %v3934_v21 = vsel %vm3927_vm11, %v4768_v53, 0.0 }
 0x4dc   :  { %3935 = vadd.xlane.f32.xlu0 %v3934_v21 }
 0x565   :  { %v3936_v30 = vpop.xlane.xlu0 %3935 }
 0x566   :  { %4769 = vlog2.f32 %v3936_v30 }
 0x573   :  { %v4770_v44 = vpop.eup %4769 }
 0x574   :  { %v3938_v14 = vmul.f32 0.6931472, %v4770_v44 }
 0x576   :  { %v3939_v38 = vsub.f32 %v3931_v35, %v3938_v14 }
 0x578   :  { %3940 = vst.msk [vmem:[%s6314_s9] sm:$0xff] %vm3927_vm11, %v3939_v38 }

</bundles_post_ra>
